<compile_context>
chip_gen: v6e
topology: v6e:2x2x1
jax: 0.10.0
libtpu: 0.0.40
codegen_flags: <defaults>
</compile_context>

<pallas_src>
import functools

import jax
import jax.numpy as jnp
from jax.experimental import pallas as pl
from jax.experimental.pallas import tpu as pltpu


def _round_up(a: int, b: int) -> int:
    return ((a + b - 1) // b) * b


# ---------------------------------------------------------------------------
# Fused kernel:  SE scale + 1x1 conv (sum over the three branch chunks) + FFN.
# Operates on one (tile_m, C) row tile per branch; grid = (B, HW_pad//tile_m).
# ---------------------------------------------------------------------------
def fused_block_kernel(x8_ref, x16_ref, x32_ref,
                       s8_ref, s16_ref, s32_ref,
                       wc8_ref, wc16_ref, wc32_ref, bc_ref,
                       wf1_ref, bf1_ref, wf2_ref, bf2_ref,
                       o_ref):
    f32 = jnp.float32
    mxu_dtype = wf1_ref.dtype            # bf16 operands, f32 accumulation

    def scaled_branch_matmul(x_ref, s_ref, w_ref):
        x = x_ref[0].astype(f32)                      # (TM, C)
        s = s_ref[0].astype(f32)                      # (1,  C)
        xs = (x * (1.0 + s)).astype(mxu_dtype)        # SE: x + x*s
        return jnp.dot(xs, w_ref[...], preferred_element_type=f32)

    # conv_intermediate: conv-of-concat == sum-of-convs over the 3 branches.
    z = (scaled_branch_matmul(x8_ref, s8_ref, wc8_ref)
         + scaled_branch_matmul(x16_ref, s16_ref, wc16_ref)
         + scaled_branch_matmul(x32_ref, s32_ref, wc32_ref)
         + bc_ref[...].astype(f32))                   # (TM, C)

    # FFN: expand -> GELU -> project -> residual around z.
    h = jax.nn.gelu(
        jnp.dot(z.astype(mxu_dtype), wf1_ref[...], preferred_element_type=f32)
        + bf1_ref[...].astype(f32))                   # (TM, 4C)
    out = (jnp.dot(h.astype(mxu_dtype), wf2_ref[...], preferred_element_type=f32)
           + bf2_ref[...].astype(f32) + z)            # (TM, C)

    o_ref[0] = out.astype(o_ref.dtype)


def _fused_block_call(f8, f16, f32b, s8, s16, s32, params, *, tile_m, out_dtype):
    """Inputs: three (B, HW_pad, C) branch tensors, three (B, 1, C) SE scales."""
    B, HWp, C = f8.shape
    Ch = params["wf1"].shape[1]

    x_spec = pl.BlockSpec((1, tile_m, C), lambda b, i: (b, i, 0))
    s_spec = pl.BlockSpec((1, 1, C), lambda b, i: (b, 0, 0))
    wcc_spec = pl.BlockSpec((C, C), lambda b, i: (0, 0))

    return pl.pallas_call(
        fused_block_kernel,
        out_shape=jax.ShapeDtypeStruct((B, HWp, C), out_dtype),
        grid_spec=pltpu.PrefetchScalarGridSpec(
            num_scalar_prefetch=0,
            grid=(B, pl.cdiv(HWp, tile_m)),
            in_specs=[
                x_spec, x_spec, x_spec,            # f8, f16, f32 branch tiles
                s_spec, s_spec, s_spec,            # SE scales (per batch)
                wcc_spec, wcc_spec, wcc_spec,      # 1x1 conv weight chunks
                pl.BlockSpec((1, C), lambda b, i: (0, 0)),    # bc
                pl.BlockSpec((C, Ch), lambda b, i: (0, 0)),   # wf1
                pl.BlockSpec((1, Ch), lambda b, i: (0, 0)),   # bf1
                pl.BlockSpec((Ch, C), lambda b, i: (0, 0)),   # wf2
                pl.BlockSpec((1, C), lambda b, i: (0, 0)),    # bf2
            ],
            out_specs=pl.BlockSpec((1, tile_m, C), lambda b, i: (b, i, 0)),
        ),
        compiler_params=pltpu.CompilerParams(
            dimension_semantics=("parallel", "parallel"),
            vmem_limit_bytes=32 * 1024 * 1024,
        ),
    )(f8, f16, f32b, s8, s16, s32,
      params["wc8"], params["wc16"], params["wc32"], params["bc"],
      params["wf1"], params["bf1"], params["wf2"], params["bf2"])


# ---------------------------------------------------------------------------
# Parameters.
# ---------------------------------------------------------------------------
def init_block_params(key, embedding_dim, reduction=16, dtype=jnp.bfloat16):
    C = embedding_dim
    C3 = 3 * C
    r = max(C3 // reduction, 1)
    Ch = 4 * C
    ks = jax.random.split(key, 9)
    scale = 0.05
    n = lambda k, shape: scale * jax.random.normal(k, shape, jnp.float32)
    return {
        # SEBlock(3C): Linear weights stored as (in, out), no bias (tiny; f32,
        # computed in plain JAX outside the kernel).
        "w_se1": n(ks[0], (C3, r)),
        "w_se2": n(ks[1], (r, C3)),
        # conv_intermediate (1x1 conv 3C -> C, bias) split into 3 (C, C) chunks.
        "wc8": n(ks[2], (C, C)).astype(dtype),
        "wc16": n(ks[3], (C, C)).astype(dtype),
        "wc32": n(ks[4], (C, C)).astype(dtype),
        "bc": n(ks[5], (1, C)),
        # FFN: C -> 4C -> C with biases.
        "wf1": n(ks[6], (C, Ch)).astype(dtype),
        "bf1": n(ks[7], (1, Ch)),
        "wf2": n(ks[8], (Ch, C)).astype(dtype),
        "bf2": jnp.zeros((1, C), jnp.float32),
    }


# ---------------------------------------------------------------------------
# Block forward (glue in plain JAX, hot path in the fused Pallas kernel).
# ---------------------------------------------------------------------------
@functools.partial(jax.jit, static_argnames=("tile_m",))
def block_forward(x_nchw, params, *, tile_m=512):
    """x_nchw: (B, C, H, W) — same convention as the PyTorch module."""
    B, C, H, W = x_nchw.shape
    HW = H * W
    act_dtype = params["wf1"].dtype

    # 1) WindowGrapher branches.
    # TODO(synk): WindowGrapher definition not provided; identity pass-through.
    # A single NCHW -> (B, HW, C) channels-last conversion (never build the
    # 3C concat nor transpose it).
    x_cl = jnp.transpose(x_nchw, (0, 2, 3, 1)).reshape(B, HW, C).astype(act_dtype)
    f8 = f16 = f32b = x_cl

    # 2)+3) SEBlock scale: mean-of-concat == concat-of-means; the two SE
    # matmuls are tiny (3C x 3C/16), so plain JAX f32 — only the (B, 3C)
    # scale enters the kernel.
    pooled = jnp.concatenate(
        [f8.astype(jnp.float32).mean(axis=1),
         f16.astype(jnp.float32).mean(axis=1),
         f32b.astype(jnp.float32).mean(axis=1)], axis=-1)          # (B, 3C)
    hse = jnp.maximum(pooled @ params["w_se1"], 0.0)
    se_scale = jax.nn.sigmoid(hse @ params["w_se2"])               # (B, 3C)
    s8, s16, s32 = [s[:, None, :] for s in jnp.split(se_scale, 3, axis=-1)]

    # Pad the spatial axis so arbitrary H*W works without shrinking tile_m.
    tm = min(tile_m, _round_up(HW, 8))
    HW_pad = _round_up(HW, tm)
    if HW_pad != HW:
        pad = ((0, 0), (0, HW_pad - HW), (0, 0))
        f8, f16, f32b = (jnp.pad(a, pad) for a in (f8, f16, f32b))

    # 3)+4)+5) SE scale + 1x1 conv + FFN — one fused Pallas kernel.
    out = _fused_block_call(f8, f16, f32b, s8, s16, s32, params,
                            tile_m=tm, out_dtype=x_nchw.dtype)
    out = out[:, :HW, :]

    # Back to NCHW (drop this transpose if the consumer accepts channels-last).
    return out.reshape(B, H, W, C).transpose(0, 3, 1, 2)


# ---------------------------------------------------------------------------
# Pure-JAX reference (f32 math, same bf16-rounded weights) for validation.
# ---------------------------------------------------------------------------
def block_forward_reference(x_nchw, params):
    B, C, H, W = x_nchw.shape
    f = jnp.transpose(x_nchw, (0, 2, 3, 1)).reshape(B, H * W, C)
    f = f.astype(jnp.float32)
    fused = jnp.concatenate([f, f, f], axis=-1)                    # identity branches
    y = fused.mean(axis=1)
    y = jnp.maximum(y @ params["w_se1"], 0.0)
    y = jax.nn.sigmoid(y @ params["w_se2"])
    se = fused + fused * y[:, None, :]
    wc = jnp.concatenate(
        [params["wc8"], params["wc16"], params["wc32"]], axis=0).astype(jnp.float32)
    z = se @ wc + params["bc"]
    h = jax.nn.gelu(z @ params["wf1"].astype(jnp.float32) + params["bf1"])
    out = h @ params["wf2"].astype(jnp.float32) + params["bf2"] + z
    return out.reshape(B, H, W, C).transpose(0, 3, 1, 2)


if __name__ == "__main__":
    embedding_dim = 16
    B, H, W = 2, 16, 16
    key = jax.random.PRNGKey(0)
    k_x, k_p = jax.random.split(key)
    x = jax.random.normal(k_x, (B, embedding_dim, H, W), jnp.float32)
    params = init_block_params(k_p, embedding_dim)

    out = block_forward(x, params)
    jax.block_until_ready(out)

    assert out.shape == (B, embedding_dim, H, W), out.shape
    assert bool(jnp.all(jnp.isfinite(out)))

    ref = block_forward_reference(x, params)
    max_diff = float(jnp.max(jnp.abs(out - ref)))
    assert max_diff < 5e-2, f"max abs diff vs reference: {max_diff}"

    print("KERNEL_OK")
</pallas_src>

<mosaic_0001>
module attributes {stable_mosaic.version = 11 : i64} {
  func.func @fused_block_kernel(%arg0: i32, %arg1: i32, %arg2: memref<1x256x16xbf16, #tpu.memory_space<vmem>>, %arg3: memref<1x256x16xbf16, #tpu.memory_space<vmem>>, %arg4: memref<1x256x16xbf16, #tpu.memory_space<vmem>>, %arg5: memref<1x1x16xf32, #tpu.memory_space<vmem>>, %arg6: memref<1x1x16xf32, #tpu.memory_space<vmem>>, %arg7: memref<1x1x16xf32, #tpu.memory_space<vmem>>, %arg8: memref<16x16xbf16, #tpu.memory_space<vmem>>, %arg9: memref<16x16xbf16, #tpu.memory_space<vmem>>, %arg10: memref<16x16xbf16, #tpu.memory_space<vmem>>, %arg11: memref<1x16xf32, #tpu.memory_space<vmem>>, %arg12: memref<16x64xbf16, #tpu.memory_space<vmem>>, %arg13: memref<1x64xf32, #tpu.memory_space<vmem>>, %arg14: memref<64x16xbf16, #tpu.memory_space<vmem>>, %arg15: memref<1x16xf32, #tpu.memory_space<vmem>>, %arg16: memref<1x256x16xf32, #tpu.memory_space<vmem>>) attributes {dimension_semantics = [#tpu.dimension_semantics<parallel>, #tpu.dimension_semantics<parallel>], iteration_bounds = array<i64: 2, 1>, scalar_prefetch = 0 : i64, scratch_operands = 0 : i64, tpu.core_type = #tpu.core_type<tc>, window_params = [{transform_indices = @transform_0, window_bounds = array<i64: 1, 256, 16>}, {transform_indices = @transform_1, window_bounds = array<i64: 1, 256, 16>}, {transform_indices = @transform_2, window_bounds = array<i64: 1, 256, 16>}, {transform_indices = @transform_3, window_bounds = array<i64: 1, 1, 16>}, {transform_indices = @transform_4, window_bounds = array<i64: 1, 1, 16>}, {transform_indices = @transform_5, window_bounds = array<i64: 1, 1, 16>}, {pipeline_mode = #tpu.pipeline_mode<synchronous>, transform_indices = @transform_6, window_bounds = array<i64: 16, 16>}, {pipeline_mode = #tpu.pipeline_mode<synchronous>, transform_indices = @transform_7, window_bounds = array<i64: 16, 16>}, {pipeline_mode = #tpu.pipeline_mode<synchronous>, transform_indices = @transform_8, window_bounds = array<i64: 16, 16>}, {pipeline_mode = #tpu.pipeline_mode<synchronous>, transform_indices = @transform_9, window_bounds = array<i64: 1, 16>}, {pipeline_mode = #tpu.pipeline_mode<synchronous>, transform_indices = @transform_10, window_bounds = array<i64: 16, 64>}, {pipeline_mode = #tpu.pipeline_mode<synchronous>, transform_indices = @transform_11, window_bounds = array<i64: 1, 64>}, {pipeline_mode = #tpu.pipeline_mode<synchronous>, transform_indices = @transform_12, window_bounds = array<i64: 64, 16>}, {pipeline_mode = #tpu.pipeline_mode<synchronous>, transform_indices = @transform_13, window_bounds = array<i64: 1, 16>}, {transform_indices = @transform_14, window_bounds = array<i64: 1, 256, 16>}]} {
    %c0 = arith.constant 0 : index
    %c0_0 = arith.constant 0 : index
    %c0_1 = arith.constant 0 : index
    %0 = vector.load %arg2[%c0, %c0_0, %c0_1] : memref<1x256x16xbf16, #tpu.memory_space<vmem>>, vector<1x256x16xbf16>
    %1 = vector.shape_cast %0 : vector<1x256x16xbf16> to vector<256x16xbf16>
    %2 = arith.extf %1 : vector<256x16xbf16> to vector<256x16xf32>
    %c0_2 = arith.constant 0 : index
    %c0_3 = arith.constant 0 : index
    %c0_4 = arith.constant 0 : index
    %3 = vector.load %arg5[%c0_2, %c0_3, %c0_4] : memref<1x1x16xf32, #tpu.memory_space<vmem>>, vector<1x1x16xf32>
    %4 = vector.shape_cast %3 : vector<1x1x16xf32> to vector<1x16xf32>
    %cst = arith.constant 1.000000e+00 : f32
    %5 = vector.broadcast %cst : f32 to vector<1x16xf32>
    %6 = arith.addf %5, %4 : vector<1x16xf32>
    %7 = vector.broadcast %6 : vector<1x16xf32> to vector<256x16xf32>
    %8 = arith.mulf %2, %7 : vector<256x16xf32>
    %9 = arith.truncf %8 : vector<256x16xf32> to vector<256x16xbf16>
    %c0_5 = arith.constant 0 : index
    %c0_6 = arith.constant 0 : index
    %10 = vector.load %arg8[%c0_5, %c0_6] : memref<16x16xbf16, #tpu.memory_space<vmem>>, vector<16x16xbf16>
    %cst_7 = arith.constant dense<0.000000e+00> : vector<256x16xf32>
    %11 = tpu.matmul %9, %10, %cst_7 {dimension_numbers = #tpu.dot_dimension_numbers<[1], [0], [0], [1], [0, 0, 1, 1], [], []>} : vector<256x16xbf16>, vector<16x16xbf16>, vector<256x16xf32> -> vector<256x16xf32>
    %c0_8 = arith.constant 0 : index
    %c0_9 = arith.constant 0 : index
    %c0_10 = arith.constant 0 : index
    %12 = vector.load %arg3[%c0_8, %c0_9, %c0_10] : memref<1x256x16xbf16, #tpu.memory_space<vmem>>, vector<1x256x16xbf16>
    %13 = vector.shape_cast %12 : vector<1x256x16xbf16> to vector<256x16xbf16>
    %14 = arith.extf %13 : vector<256x16xbf16> to vector<256x16xf32>
    %c0_11 = arith.constant 0 : index
    %c0_12 = arith.constant 0 : index
    %c0_13 = arith.constant 0 : index
    %15 = vector.load %arg6[%c0_11, %c0_12, %c0_13] : memref<1x1x16xf32, #tpu.memory_space<vmem>>, vector<1x1x16xf32>
    %16 = vector.shape_cast %15 : vector<1x1x16xf32> to vector<1x16xf32>
    %cst_14 = arith.constant 1.000000e+00 : f32
    %17 = vector.broadcast %cst_14 : f32 to vector<1x16xf32>
    %18 = arith.addf %17, %16 : vector<1x16xf32>
    %19 = vector.broadcast %18 : vector<1x16xf32> to vector<256x16xf32>
    %20 = arith.mulf %14, %19 : vector<256x16xf32>
    %21 = arith.truncf %20 : vector<256x16xf32> to vector<256x16xbf16>
    %c0_15 = arith.constant 0 : index
    %c0_16 = arith.constant 0 : index
    %22 = vector.load %arg9[%c0_15, %c0_16] : memref<16x16xbf16, #tpu.memory_space<vmem>>, vector<16x16xbf16>
    %cst_17 = arith.constant dense<0.000000e+00> : vector<256x16xf32>
    %23 = tpu.matmul %21, %22, %cst_17 {dimension_numbers = #tpu.dot_dimension_numbers<[1], [0], [0], [1], [0, 0, 1, 1], [], []>} : vector<256x16xbf16>, vector<16x16xbf16>, vector<256x16xf32> -> vector<256x16xf32>
    %24 = arith.addf %11, %23 : vector<256x16xf32>
    %c0_18 = arith.constant 0 : index
    %c0_19 = arith.constant 0 : index
    %c0_20 = arith.constant 0 : index
    %25 = vector.load %arg4[%c0_18, %c0_19, %c0_20] : memref<1x256x16xbf16, #tpu.memory_space<vmem>>, vector<1x256x16xbf16>
    %26 = vector.shape_cast %25 : vector<1x256x16xbf16> to vector<256x16xbf16>
    %27 = arith.extf %26 : vector<256x16xbf16> to vector<256x16xf32>
    %c0_21 = arith.constant 0 : index
    %c0_22 = arith.constant 0 : index
    %c0_23 = arith.constant 0 : index
    %28 = vector.load %arg7[%c0_21, %c0_22, %c0_23] : memref<1x1x16xf32, #tpu.memory_space<vmem>>, vector<1x1x16xf32>
    %29 = vector.shape_cast %28 : vector<1x1x16xf32> to vector<1x16xf32>
    %cst_24 = arith.constant 1.000000e+00 : f32
    %30 = vector.broadcast %cst_24 : f32 to vector<1x16xf32>
    %31 = arith.addf %30, %29 : vector<1x16xf32>
    %32 = vector.broadcast %31 : vector<1x16xf32> to vector<256x16xf32>
    %33 = arith.mulf %27, %32 : vector<256x16xf32>
    %34 = arith.truncf %33 : vector<256x16xf32> to vector<256x16xbf16>
    %c0_25 = arith.constant 0 : index
    %c0_26 = arith.constant 0 : index
    %35 = vector.load %arg10[%c0_25, %c0_26] : memref<16x16xbf16, #tpu.memory_space<vmem>>, vector<16x16xbf16>
    %cst_27 = arith.constant dense<0.000000e+00> : vector<256x16xf32>
    %36 = tpu.matmul %34, %35, %cst_27 {dimension_numbers = #tpu.dot_dimension_numbers<[1], [0], [0], [1], [0, 0, 1, 1], [], []>} : vector<256x16xbf16>, vector<16x16xbf16>, vector<256x16xf32> -> vector<256x16xf32>
    %37 = arith.addf %24, %36 : vector<256x16xf32>
    %c0_28 = arith.constant 0 : index
    %c0_29 = arith.constant 0 : index
    %38 = vector.load %arg11[%c0_28, %c0_29] : memref<1x16xf32, #tpu.memory_space<vmem>>, vector<1x16xf32>
    %39 = vector.broadcast %38 : vector<1x16xf32> to vector<256x16xf32>
    %40 = arith.addf %37, %39 : vector<256x16xf32>
    %41 = arith.truncf %40 : vector<256x16xf32> to vector<256x16xbf16>
    %c0_30 = arith.constant 0 : index
    %c0_31 = arith.constant 0 : index
    %42 = vector.load %arg12[%c0_30, %c0_31] : memref<16x64xbf16, #tpu.memory_space<vmem>>, vector<16x64xbf16>
    %cst_32 = arith.constant dense<0.000000e+00> : vector<256x64xf32>
    %43 = tpu.matmul %41, %42, %cst_32 {dimension_numbers = #tpu.dot_dimension_numbers<[1], [0], [0], [1], [0, 0, 1, 1], [], []>} : vector<256x16xbf16>, vector<16x64xbf16>, vector<256x64xf32> -> vector<256x64xf32>
    %c0_33 = arith.constant 0 : index
    %c0_34 = arith.constant 0 : index
    %44 = vector.load %arg13[%c0_33, %c0_34] : memref<1x64xf32, #tpu.memory_space<vmem>>, vector<1x64xf32>
    %45 = vector.broadcast %44 : vector<1x64xf32> to vector<256x64xf32>
    %46 = arith.addf %43, %45 : vector<256x64xf32>
    %47 = arith.mulf %46, %46 : vector<256x64xf32>
    %48 = arith.mulf %46, %47 : vector<256x64xf32>
    %cst_35 = arith.constant 4.471500e-02 : f32
    %49 = vector.broadcast %cst_35 : f32 to vector<256x64xf32>
    %50 = arith.mulf %49, %48 : vector<256x64xf32>
    %51 = arith.addf %46, %50 : vector<256x64xf32>
    %cst_36 = arith.constant 0.797884583 : f32
    %52 = vector.broadcast %cst_36 : f32 to vector<256x64xf32>
    %53 = arith.mulf %52, %51 : vector<256x64xf32>
    %54 = math.tanh %53 : vector<256x64xf32>
    %cst_37 = arith.constant 1.000000e+00 : f32
    %55 = vector.broadcast %cst_37 : f32 to vector<256x64xf32>
    %56 = arith.addf %55, %54 : vector<256x64xf32>
    %cst_38 = arith.constant 5.000000e-01 : f32
    %57 = vector.broadcast %cst_38 : f32 to vector<256x64xf32>
    %58 = arith.mulf %57, %56 : vector<256x64xf32>
    %59 = arith.mulf %46, %58 : vector<256x64xf32>
    %60 = arith.truncf %59 : vector<256x64xf32> to vector<256x64xbf16>
    %c0_39 = arith.constant 0 : index
    %c0_40 = arith.constant 0 : index
    %61 = vector.load %arg14[%c0_39, %c0_40] : memref<64x16xbf16, #tpu.memory_space<vmem>>, vector<64x16xbf16>
    %cst_41 = arith.constant dense<0.000000e+00> : vector<256x16xf32>
    %62 = tpu.matmul %60, %61, %cst_41 {dimension_numbers = #tpu.dot_dimension_numbers<[1], [0], [0], [1], [0, 0, 1, 1], [], []>} : vector<256x64xbf16>, vector<64x16xbf16>, vector<256x16xf32> -> vector<256x16xf32>
    %c0_42 = arith.constant 0 : index
    %c0_43 = arith.constant 0 : index
    %63 = vector.load %arg15[%c0_42, %c0_43] : memref<1x16xf32, #tpu.memory_space<vmem>>, vector<1x16xf32>
    %64 = vector.broadcast %63 : vector<1x16xf32> to vector<256x16xf32>
    %65 = arith.addf %62, %64 : vector<256x16xf32>
    %66 = arith.addf %65, %40 : vector<256x16xf32>
    %c0_44 = arith.constant 0 : index
    %c0_45 = arith.constant 0 : index
    %c0_46 = arith.constant 0 : index
    %67 = vector.load %arg16[%c0_44, %c0_45, %c0_46] : memref<1x256x16xf32, #tpu.memory_space<vmem>>, vector<1x256x16xf32>
    %68 = vector.shape_cast %67 : vector<1x256x16xf32> to vector<256x16xf32>
    %69 = vector.shape_cast %66 : vector<256x16xf32> to vector<1x256x16xf32>
    tpu.vector_store %arg16[%c0_44, %c0_45, %c0_46], %69 {strides = array<i32>} : memref<1x256x16xf32, #tpu.memory_space<vmem>>, vector<1x256x16xf32>,
    return
  }
  func.func @transform_0(%arg0: i32, %arg1: i32) -> (i32, i32, i32) {
    %c0_i32 = arith.constant 0 : i32
    %c0_i32_0 = arith.constant 0 : i32
    return %arg0, %arg1, %c0_i32 : i32, i32, i32
  }
  func.func @transform_1(%arg0: i32, %arg1: i32) -> (i32, i32, i32) {
    %c0_i32 = arith.constant 0 : i32
    %c0_i32_0 = arith.constant 0 : i32
    return %arg0, %arg1, %c0_i32 : i32, i32, i32
  }
  func.func @transform_2(%arg0: i32, %arg1: i32) -> (i32, i32, i32) {
    %c0_i32 = arith.constant 0 : i32
    %c0_i32_0 = arith.constant 0 : i32
    return %arg0, %arg1, %c0_i32 : i32, i32, i32
  }
  func.func @transform_3(%arg0: i32, %arg1: i32) -> (i32, i32, i32) {
    %c0_i32 = arith.constant 0 : i32
    %c0_i32_0 = arith.constant 0 : i32
    %c0_i32_1 = arith.constant 0 : i32
    return %arg0, %c0_i32, %c0_i32_0 : i32, i32, i32
  }
  func.func @transform_4(%arg0: i32, %arg1: i32) -> (i32, i32, i32) {
    %c0_i32 = arith.constant 0 : i32
    %c0_i32_0 = arith.constant 0 : i32
    %c0_i32_1 = arith.constant 0 : i32
    return %arg0, %c0_i32, %c0_i32_0 : i32, i32, i32
  }
  func.func @transform_5(%arg0: i32, %arg1: i32) -> (i32, i32, i32) {
    %c0_i32 = arith.constant 0 : i32
    %c0_i32_0 = arith.constant 0 : i32
    %c0_i32_1 = arith.constant 0 : i32
    return %arg0, %c0_i32, %c0_i32_0 : i32, i32, i32
  }
  func.func @transform_6(%arg0: i32, %arg1: i32) -> (i32, i32) {
    %c0_i32 = arith.constant 0 : i32
    %c0_i32_0 = arith.constant 0 : i32
    %c0_i32_1 = arith.constant 0 : i32
    return %c0_i32, %c0_i32_0 : i32, i32
  }
  func.func @transform_7(%arg0: i32, %arg1: i32) -> (i32, i32) {
    %c0_i32 = arith.constant 0 : i32
    %c0_i32_0 = arith.constant 0 : i32
    %c0_i32_1 = arith.constant 0 : i32
    return %c0_i32, %c0_i32_0 : i32, i32
  }
  func.func @transform_8(%arg0: i32, %arg1: i32) -> (i32, i32) {
    %c0_i32 = arith.constant 0 : i32
    %c0_i32_0 = arith.constant 0 : i32
    %c0_i32_1 = arith.constant 0 : i32
    return %c0_i32, %c0_i32_0 : i32, i32
  }
  func.func @transform_9(%arg0: i32, %arg1: i32) -> (i32, i32) {
    %c0_i32 = arith.constant 0 : i32
    %c0_i32_0 = arith.constant 0 : i32
    %c0_i32_1 = arith.constant 0 : i32
    return %c0_i32, %c0_i32_0 : i32, i32
  }
  func.func @transform_10(%arg0: i32, %arg1: i32) -> (i32, i32) {
    %c0_i32 = arith.constant 0 : i32
    %c0_i32_0 = arith.constant 0 : i32
    %c0_i32_1 = arith.constant 0 : i32
    return %c0_i32, %c0_i32_0 : i32, i32
  }
  func.func @transform_11(%arg0: i32, %arg1: i32) -> (i32, i32) {
    %c0_i32 = arith.constant 0 : i32
    %c0_i32_0 = arith.constant 0 : i32
    %c0_i32_1 = arith.constant 0 : i32
    return %c0_i32, %c0_i32_0 : i32, i32
  }
  func.func @transform_12(%arg0: i32, %arg1: i32) -> (i32, i32) {
    %c0_i32 = arith.constant 0 : i32
    %c0_i32_0 = arith.constant 0 : i32
    %c0_i32_1 = arith.constant 0 : i32
    return %c0_i32, %c0_i32_0 : i32, i32
  }
  func.func @transform_13(%arg0: i32, %arg1: i32) -> (i32, i32) {
    %c0_i32 = arith.constant 0 : i32
    %c0_i32_0 = arith.constant 0 : i32
    %c0_i32_1 = arith.constant 0 : i32
    return %c0_i32, %c0_i32_0 : i32, i32
  }
  func.func @transform_14(%arg0: i32, %arg1: i32) -> (i32, i32, i32) {
    %c0_i32 = arith.constant 0 : i32
    %c0_i32_0 = arith.constant 0 : i32
    return %arg0, %arg1, %c0_i32 : i32, i32, i32
  }
}

</mosaic_0001>

<bundles_post_ra>
// kernel: block_forward.1
= control target key start
LH: loop header
LB: loop body
LE: loop exit
PB: predicated region body
PF: predicated region fallthrough
CT: control target
= control target key end

     0   :  { %s3520_s29 = smov 0   ;;  %s3522_s30 = smov 0   ;;  %s4476_s0 = inlined_call_operand.vmem [shape: bf16[2,256,16], index: 0, kind: input, shape index: {}, may-alias: {0,1,2}]   ;;  %s4477_s1 = inlined_call_operand.vmem [shape: bf16[2,256,16], index: 1, kind: input, shape index: {}, may-alias: {0,1,2}]   ;;  %s4478_s2 = inlined_call_operand.vmem [shape: bf16[2,256,16], index: 2, kind: input, shape index: {}, may-alias: {0,1,2}]   ;;  %s4479_s3 = inlined_call_operand.vmem [shape: f32[2,1,16], index: 3, kind: input, shape index: {}]   ;;  %s4480_s4 = inlined_call_operand.vmem [shape: f32[2,1,16], index: 4, kind: input, shape index: {}]   ;;  %s4481_s5 = inlined_call_operand.vmem [shape: f32[2,1,16], index: 5, kind: input, shape index: {}]   ;;  %s4482_s6 = inlined_call_operand.vmem [shape: bf16[16,16], index: 6, kind: input, shape index: {}]   ;;  %s4483_s7 = inlined_call_operand.vmem [shape: bf16[16,16], index: 7, kind: input, shape index: {}]   ;;  %s4484_s8 = inlined_call_operand.vmem [shape: bf16[16,16], index: 8, kind: input, shape index: {}]   ;;  %s4485_s9 = inlined_call_operand.vmem [shape: f32[1,16], index: 9, kind: input, shape index: {}]   ;;  %s4486_s10 = inlined_call_operand.vmem [shape: bf16[16,64], index: 10, kind: input, shape index: {}]   ;;  %s4487_s11 = inlined_call_operand.vmem [shape: f32[1,64], index: 11, kind: input, shape index: {}]   ;;  %s4488_s12 = inlined_call_operand.vmem [shape: bf16[64,16], index: 12, kind: input, shape index: {}]   ;;  %s4489_s13 = inlined_call_operand.vmem [shape: f32[1,16], index: 13, kind: input, shape index: {}]   ;;  %s4490_s14 = inlined_call_operand.vmem [shape: f32[2,256,16], index: 14, kind: output, shape index: {}]  }
   0x1   :  { %s3524_s15 = smov 0  }
   0x2 LB: > { %s36_s16 = sadd.s32 1, %s3439_s30  ;;  %p2716_p0 = scmp.ge.s32.totalorder %s3443_s15, 1  ;;  %s3443_s15 = sphi %s3524_s15, %s24_s15   ;;  %s3439_s30 = sphi %s3522_s30, %s4552_s30   ;;  %s3435_s29 = sphi %s3520_s29, %s4551_s29  }
   0x3   : > { %p38_p1 = scmp.ge.s32.totalorder %s36_s16, 2  ;;  %p491_p2 = scmp.lt.s32.totalorder %s3443_s15, 3 }
   0x5   : > { %s4554_s16 = smov (%p38_p1, %s36_s16), 0  ;;  %p492_p3 = pnand %p2716_p0, %p491_p2 }
   0x7   : > { %495 = sbr.rel (%p492_p3) target bundleno = 776 (0x308), region = 76 }
   0xc   : > { %v3349_v0 = vld [vmem:[%s4483_s7] sm:$0xff]   ;;  %p573_p4 = scmp.lt.s32.totalorder %s3435_s29, 1  ;;  %v689_v1 = vlaneseq  ;;  %vm872_vm0 = vcmask 130048   ;;  %vm2288_vm1 = vcmask 523264  }
   0xd   : > { %v3544_v2 = vld [vmem:[%s4482_s6] sm:$0xff]   ;;  %3323 = vmatprep.subr.bf16.mxu1 %v3349_v0  ;;  %3147 = vmatprep.subr.bf16.mxu0 %v3349_v0 }
   0xe   : > { %s4556_s29 = smov (!%p573_p4, %s3435_s29), 1  ;;  %v690_v3 = vshrl.u32 %v689_v1, 7  ;;  %3324 = vmatpush3.bf16.msra.mxu1 %v3349_v0  ;;  %3148 = vmatpush3.bf16.msra.mxu0 %v3349_v0  ;;  %v3551_v4 = vld [vmem:[%s4484_s8] sm:$0xff]  }
   0xf   : > { %s3554_s23 = sshll.u32 %s4556_s29, 7  ;;  %3181 = vmatprep.subr.bf16.mxu1 %v3544_v2  ;;  %3215 = vmatprep.subr.bf16.mxu0 %v3551_v4  ;;  %s607_s17 = scalar_lea.vmem %s4480_s4, %s4556_s29  ;;  %v3610_v56 = vld [vmem:[%s4486_s10] sm:$0xff]  }
  0x10   : > { %s3561_s26 = scalar_lea.vmem %s4477_s1, %s3554_s23  ;;  %v3568_v5 = vsub.s32 0, %v690_v3  ;;  %v808_v10 = vld [vmem:[%s607_s17] sm:$0x1]  ;;  %s604_s20 = scalar_lea.vmem %s4479_s3, %s4556_s29 }
  0x11   : > { %v2887_v6 = vld [vmem:[%s3561_s26] sm:$0xff]   ;;  %v3029_v8 = vld [vmem:[%s3561_s26 + $0x8] sm:$0xff]   ;;  %v3030_v12 = vld [vmem:[%s3561_s26 + $0x10] sm:$0xff]   ;;  %v809_v14 = vadd.f32 1.0, %v808_v10  ;;  %s610_s24 = scalar_lea.vmem %s4481_s5, %s4556_s29  ;;  %s3633_s18 = scalar_lea.vmem %s4476_s0, %s3554_s23 }
  0x12   : > { %v3036_v7 = vld [vmem:[%s3561_s26 + $0x40] sm:$0xff]   ;;  %v2888_v9 = vunpack.c.l.bf16 %v2887_v6  ;;  %v3037_v11 = vld [vmem:[%s3561_s26 + $0x48] sm:$0xff]   ;;  %v2889_v13 = vunpack.c.h.bf16 %v2887_v6  ;;  %v3038_v17 = vld [vmem:[%s3561_s26 + $0x50] sm:$0xff]   ;;  %v2892_v19 = vunpack.c.l.bf16 %v3029_v8  ;;  %v2893_v20 = vunpack.c.h.bf16 %v3029_v8  ;;  %s3639_s21 = scalar_lea.vmem %s4478_s2, %s3554_s23  ;;  %s2821_s22 = sshll.u32 %s4556_s29, 8 }
  0x13   : > { %v2920_v15 = vunpack.c.l.bf16 %v3036_v7  ;;  %v2921_v16 = vunpack.c.h.bf16 %v3036_v7  ;;  %v3031_v18 = vld [vmem:[%s3561_s26 + $0x18] sm:$0xff]   ;;  %v2924_v21 = vunpack.c.l.bf16 %v3037_v11  ;;  %v2925_v22 = vunpack.c.h.bf16 %v3037_v11  ;;  %v3032_v44 = vld [vmem:[%s3561_s26 + $0x20] sm:$0xff]   ;;  %v3033_v61 = vld [vmem:[%s3561_s26 + $0x28] sm:$0xff]   ;;  %s4338_s27 = scalar_lea.vmem %s4490_s14, %s2821_s22 }
  0x14   : > { %v3039_v23 = vld [vmem:[%s3561_s26 + $0x58] sm:$0xff]   ;;  %v3579_v24 = vrot.slane %v809_v14, %v3568_v5  ;;  %v2896_v25 = vunpack.c.l.bf16 %v3030_v12  ;;  %v2897_v26 = vunpack.c.h.bf16 %v3030_v12  ;;  %v2928_v27 = vunpack.c.l.bf16 %v3038_v17  ;;  %v3040_v49 = vld [vmem:[%s3561_s26 + $0x60] sm:$0xff]   ;;  %v3041_v1 = vld [vmem:[%s3561_s26 + $0x68] sm:$0xff]  }
  0x15   : > { %v2929_v28 = vunpack.c.h.bf16 %v3038_v17  ;;  %v2900_v29 = vunpack.c.l.bf16 %v3031_v18  ;;  %v2901_v30 = vunpack.c.h.bf16 %v3031_v18  ;;  %v2932_v31 = vunpack.c.l.bf16 %v3039_v23  ;;  %v686_v50 = vld [vmem:[%s604_s20] sm:$0x1]  ;;  %v3042_v12 = vld [vmem:[%s3561_s26 + $0x70] sm:$0xff]  }
  0x16   : > { %v816_v32 = vmul.f32 %v2888_v9, %v3579_v24  ;;  %v817_v33 = vmul.f32 %v2889_v13, %v3579_v24  ;;  %v832_v34 = vmul.f32 %v2920_v15, %v3579_v24  ;;  %v833_v35 = vmul.f32 %v2921_v16, %v3579_v24  ;;  %v1361_v51 = vld [vmem:[%s610_s24] sm:$0x1] }
  0x17   : > { %v818_v36 = vmul.f32 %v2892_v19, %v3579_v24  ;;  %v819_v37 = vmul.f32 %v2893_v20, %v3579_v24  ;;  %v834_v38 = vmul.f32 %v2924_v21, %v3579_v24  ;;  %v835_v39 = vmul.f32 %v2925_v22, %v3579_v24 }
  0x18   : > { %v848_v40 = vpack.c.bf16 %v817_v33, %v816_v32  ;;  %v856_v41 = vpack.c.bf16 %v833_v35, %v832_v34  ;;  %v820_v42 = vmul.f32 %v2896_v25, %v3579_v24  ;;  %v821_v43 = vmul.f32 %v2897_v26, %v3579_v24  ;;  %v2823_v34 = vld [vmem:[%s3633_s18] sm:$0xff]  }
  0x19   : > { %v849_v45 = vpack.c.bf16 %v819_v37, %v818_v36  ;;  %v857_v46 = vpack.c.bf16 %v835_v39, %v834_v38  ;;  %v836_v47 = vmul.f32 %v2928_v27, %v3579_v24  ;;  %v837_v48 = vmul.f32 %v2929_v28, %v3579_v24  ;;  %v2951_v37 = vld [vmem:[%s3639_s21] sm:$0xff]  }
  0x1a   : > { %3149 = vmatprep.mubr.msk.bf16.mxu0 %vm872_vm0, %v848_v40  ;;  %3165 = vmatprep.mubr.msk.bf16.mxu1 %vm872_vm0, %v856_v41  ;;  %v850_v52 = vpack.c.bf16 %v821_v43, %v820_v42  ;;  %v822_v53 = vmul.f32 %v2900_v29, %v3579_v24  ;;  %v823_v54 = vmul.f32 %v2901_v30, %v3579_v24  ;;  %v2933_v55 = vunpack.c.h.bf16 %v3039_v23  ;;  %v3035_v29 = vld [vmem:[%s3561_s26 + $0x38] sm:$0xff]  }
  0x1b   : > { %3150 = vmatmul.mubr.msk.bf16.vlgmr.msra.gmra.mxu0 %vm872_vm0, %v849_v45  ;;  %3166 = vmatmul.mubr.msk.bf16.vlgmr.msra.gmra.mxu1 %vm872_vm0, %v857_v46  ;;  %v858_v57 = vpack.c.bf16 %v837_v48, %v836_v47  ;;  %v838_v58 = vmul.f32 %v2932_v31, %v3579_v24  ;;  %v2904_v59 = vunpack.c.l.bf16 %v3032_v44  ;;  %v2905_v60 = vunpack.c.h.bf16 %v3032_v44  ;;  %v3043_v30 = vld [vmem:[%s3561_s26 + $0x78] sm:$0xff]  }
  0x1c   : > { %3182 = vmatpush3.bf16.msra.mxu1 %v3544_v2  ;;  %3216 = vmatpush3.bf16.msra.mxu0 %v3551_v4  ;;  %v839_v62 = vmul.f32 %v2933_v55, %v3579_v24  ;;  %v2936_v63 = vunpack.c.l.bf16 %v3040_v49  ;;  %v2937_v0 = vunpack.c.h.bf16 %v3040_v49  ;;  %v687_v3 = vadd.f32 1.0, %v686_v50  ;;  %v3034_v2 = vld [vmem:[%s3561_s26 + $0x30] sm:$0xff]   ;;  %v3014_v55 = vld [vmem:[%s3633_s18 + $0x8] sm:$0xff]  }
  0x1d   : > { %v1362_v6 = vadd.f32 1.0, %v1361_v51  ;;  %3153 = vmatprep.mubr.msk.bf16.mxu0 %vm872_vm0, %v850_v52  ;;  %3169 = vmatprep.mubr.msk.bf16.mxu1 %vm872_vm0, %v858_v57  ;;  %v824_v7 = vmul.f32 %v2904_v59, %v3579_v24  ;;  %v825_v8 = vmul.f32 %v2905_v60, %v3579_v24  ;;  %v2908_v10 = vunpack.c.l.bf16 %v3033_v61  ;;  %v3044_v59 = vld [vmem:[%s3639_s21 + $0x8] sm:$0xff]   ;;  %v3015_v60 = vld [vmem:[%s3633_s18 + $0x10] sm:$0xff]  }
  0x1e   : > { %v840_v4 = vmul.f32 %v2936_v63, %v3579_v24  ;;  %v841_v9 = vmul.f32 %v2937_v0, %v3579_v24  ;;  %v2909_v11 = vunpack.c.h.bf16 %v3033_v61  ;;  %3249 = vmatprep.subr.bf16.mxu1 %v3610_v56  ;;  %v851_v13 = vpack.c.bf16 %v823_v54, %v822_v53 }
  0x1f   : > { %v859_v14 = vpack.c.bf16 %v839_v62, %v838_v58  ;;  %v2940_v15 = vunpack.c.l.bf16 %v3041_v1  ;;  %v2941_v16 = vunpack.c.h.bf16 %v3041_v1  ;;  %v852_v17 = vpack.c.bf16 %v825_v8, %v824_v7 }
  0x20   : > { %v860_v18 = vpack.c.bf16 %v841_v9, %v840_v4  ;;  %v2912_v19 = vunpack.c.l.bf16 %v3034_v2  ;;  %v2913_v20 = vunpack.c.h.bf16 %v3034_v2  ;;  %v2944_v21 = vunpack.c.l.bf16 %v3042_v12 }
  0x21   : > { %v2945_v22 = vunpack.c.h.bf16 %v3042_v12  ;;  %v826_v23 = vmul.f32 %v2908_v10, %v3579_v24  ;;  %v827_v25 = vmul.f32 %v2909_v11, %v3579_v24  ;;  %v842_v26 = vmul.f32 %v2940_v15, %v3579_v24  ;;  %v3016_v15 = vld [vmem:[%s3633_s18 + $0x18] sm:$0xff]  }
  0x22   : > { %v843_v27 = vmul.f32 %v2941_v16, %v3579_v24  ;;  %v828_v28 = vmul.f32 %v2912_v19, %v3579_v24  ;;  %v829_v31 = vmul.f32 %v2913_v20, %v3579_v24  ;;  %v844_v32 = vmul.f32 %v2944_v21, %v3579_v24  ;;  %v3046_v16 = vld [vmem:[%s3639_s21 + $0x18] sm:$0xff]   ;;  %v3017_v20 = vld [vmem:[%s3633_s18 + $0x20] sm:$0xff]  }
  0x23   : > { %3154 = vmatmul.mubr.msk.bf16.gmra.mxu0 %vm872_vm0, %v851_v13  ;;  %3170 = vmatmul.mubr.msk.bf16.gmra.mxu1 %vm872_vm0, %v859_v14  ;;  %v845_v33 = vmul.f32 %v2945_v22, %v3579_v24  ;;  %v3657_v35 = vrot.slane %v687_v3, %v3568_v5  ;;  %v3660_v36 = vrot.slane %v1362_v6, %v3568_v5  ;;  %v2916_v38 = vunpack.c.l.bf16 %v3035_v29  ;;  %v3047_v21 = vld [vmem:[%s3639_s21 + $0x20] sm:$0xff]  }
  0x24   : > { %3157 = vmatprep.mubr.msk.bf16.mxu0 %vm872_vm0, %v852_v17  ;;  %3173 = vmatprep.mubr.msk.bf16.mxu1 %vm872_vm0, %v860_v18  ;;  %v2917_v39 = vunpack.c.h.bf16 %v3035_v29  ;;  %v2948_v40 = vunpack.c.l.bf16 %v3043_v30  ;;  %v2949_v41 = vunpack.c.h.bf16 %v3043_v30  ;;  %v853_v42 = vpack.c.bf16 %v827_v25, %v826_v23 }
  0x25   : > { %v861_v43 = vpack.c.bf16 %v843_v27, %v842_v26  ;;  %v2824_v44 = vunpack.c.l.bf16 %v2823_v34  ;;  %v2825_v45 = vunpack.c.h.bf16 %v2823_v34  ;;  %v854_v46 = vpack.c.bf16 %v829_v31, %v828_v28 }
  0x26   : > { %v862_v47 = vpack.c.bf16 %v845_v33, %v844_v32  ;;  %v2952_v48 = vunpack.c.l.bf16 %v2951_v37  ;;  %v2953_v49 = vunpack.c.h.bf16 %v2951_v37  ;;  %v830_v5 = vmul.f32 %v2916_v38, %v3579_v24 }
  0x27   : > { %v831_v50 = vmul.f32 %v2917_v39, %v3579_v24  ;;  %v846_v51 = vmul.f32 %v2948_v40, %v3579_v24  ;;  %v847_v52 = vmul.f32 %v2949_v41, %v3579_v24  ;;  %v694_v53 = vmul.f32 %v2824_v44, %v3657_v35  ;;  %v3045_v24 = vld [vmem:[%s3639_s21 + $0x10] sm:$0xff]  }
  0x28   : > { %v695_v54 = vmul.f32 %v2825_v45, %v3657_v35  ;;  %v1369_v57 = vmul.f32 %v2952_v48, %v3660_v36  ;;  %v1370_v58 = vmul.f32 %v2953_v49, %v3660_v36  ;;  %v2828_v63 = vunpack.c.l.bf16 %v3014_v55  ;;  %v3049_v48 = vld [vmem:[%s3639_s21 + $0x30] sm:$0xff]  }
  0x29   : > { %v855_v61 = vpack.c.bf16 %v831_v50, %v830_v5  ;;  %v863_v62 = vpack.c.bf16 %v847_v52, %v846_v51  ;;  %v2829_v0 = vunpack.c.h.bf16 %v3014_v55  ;;  %v2956_v3 = vunpack.c.l.bf16 %v3044_v59 }
  0x2a   : > { %v726_v1 = vpack.c.bf16 %v695_v54, %v694_v53  ;;  %v2957_v6 = vunpack.c.h.bf16 %v3044_v59  ;;  %v2832_v7 = vunpack.c.l.bf16 %v3015_v60  ;;  %v1401_v8 = vpack.c.bf16 %v1370_v58, %v1369_v57 }
  0x2b   : > { %3158 = vmatmul.mubr.msk.bf16.gmra.mxu0 %vm872_vm0, %v853_v42  ;;  %3174 = vmatmul.mubr.msk.bf16.gmra.mxu1 %vm872_vm0, %v861_v43  ;;  %v2833_v2 = vunpack.c.h.bf16 %v3015_v60  ;;  %v2960_v4 = vunpack.c.l.bf16 %v3045_v24  ;;  %v2961_v9 = vunpack.c.h.bf16 %v3045_v24  ;;  %v696_v10 = vmul.f32 %v2828_v63, %v3657_v35  ;;  %v3018_v43 = vld [vmem:[%s3633_s18 + $0x28] sm:$0xff]  }
  0x2c   : > { %3161 = vmatprep.mubr.msk.bf16.mxu0 %vm872_vm0, %v854_v46  ;;  %3177 = vmatprep.mubr.msk.bf16.mxu1 %vm872_vm0, %v862_v47  ;;  %v697_v11 = vmul.f32 %v2829_v0, %v3657_v35  ;;  %v1371_v12 = vmul.f32 %v2956_v3, %v3660_v36  ;;  %v1372_v13 = vmul.f32 %v2957_v6, %v3660_v36  ;;  %v2836_v22 = vunpack.c.l.bf16 %v3016_v15  ;;  %v3048_v46 = vld [vmem:[%s3639_s21 + $0x28] sm:$0xff]   ;;  %v3019_v47 = vld [vmem:[%s3633_s18 + $0x30] sm:$0xff]   ;;  %v3020_v0 = vld [vmem:[%s3633_s18 + $0x38] sm:$0xff]  }
  0x2d   : > { %v698_v14 = vmul.f32 %v2832_v7, %v3657_v35  ;;  %v699_v17 = vmul.f32 %v2833_v2, %v3657_v35  ;;  %v1373_v18 = vmul.f32 %v2960_v4, %v3660_v36  ;;  %v1374_v19 = vmul.f32 %v2961_v9, %v3660_v36  ;;  %v3051_v2 = vld [vmem:[%s3639_s21 + $0x40] sm:$0xff]  }
  0x2e   : > { %v2837_v23 = vunpack.c.h.bf16 %v3016_v15  ;;  %v2964_v25 = vunpack.c.l.bf16 %v3046_v16  ;;  %v2965_v26 = vunpack.c.h.bf16 %v3046_v16  ;;  %v727_v27 = vpack.c.bf16 %v697_v11, %v696_v10 }
  0x2f   : > { %v1402_v28 = vpack.c.bf16 %v1372_v13, %v1371_v12  ;;  %v2840_v29 = vunpack.c.l.bf16 %v3017_v20  ;;  %v2841_v30 = vunpack.c.h.bf16 %v3017_v20  ;;  %v728_v31 = vpack.c.bf16 %v699_v17, %v698_v14 }
  0x30   : > { %v1403_v32 = vpack.c.bf16 %v1374_v19, %v1373_v18  ;;  %v2968_v33 = vunpack.c.l.bf16 %v3047_v21  ;;  %v2969_v34 = vunpack.c.h.bf16 %v3047_v21  ;;  %v700_v37 = vmul.f32 %v2836_v22, %v3657_v35 }
  0x31   : > { %v701_v38 = vmul.f32 %v2837_v23, %v3657_v35  ;;  %v1375_v39 = vmul.f32 %v2964_v25, %v3660_v36  ;;  %v1376_v40 = vmul.f32 %v2965_v26, %v3660_v36  ;;  %v702_v41 = vmul.f32 %v2840_v29, %v3657_v35 }
  0x32   : > { %v703_v42 = vmul.f32 %v2841_v30, %v3657_v35  ;;  %v1377_v44 = vmul.f32 %v2968_v33, %v3660_v36  ;;  %v1378_v45 = vmul.f32 %v2969_v34, %v3660_v36  ;;  %v2844_v50 = vunpack.c.l.bf16 %v3018_v43  ;;  %v3052_v30 = vld [vmem:[%s3639_s21 + $0x48] sm:$0xff]  }
  0x33   : > { %3162 = vmatmul.mubr.msk.bf16.gmra.mxu0 %vm872_vm0, %v855_v61  ;;  %3178 = vmatmul.mubr.msk.bf16.gmra.mxu1 %vm872_vm0, %v863_v62  ;;  %v729_v49 = vpack.c.bf16 %v701_v38, %v700_v37  ;;  %v1404_v5 = vpack.c.bf16 %v1376_v40, %v1375_v39  ;;  %v2845_v51 = vunpack.c.h.bf16 %v3018_v43  ;;  %v2972_v53 = vunpack.c.l.bf16 %v3048_v46 }
  0x34   : > { %3183 = vmatprep.mubr.msk.bf16.mxu1 %vm872_vm0, %v726_v1  ;;  %3217 = vmatprep.mubr.msk.bf16.mxu0 %vm872_vm0, %v1401_v8  ;;  %v730_v52 = vpack.c.bf16 %v703_v42, %v702_v41  ;;  %v2973_v54 = vunpack.c.h.bf16 %v3048_v46  ;;  %v2848_v55 = vunpack.c.l.bf16 %v3019_v47  ;;  %v1405_v57 = vpack.c.bf16 %v1378_v45, %v1377_v44  ;;  %v3050_v1 = vld [vmem:[%s3639_s21 + $0x38] sm:$0xff]   ;;  %v3021_v8 = vld [vmem:[%s3633_s18 + $0x40] sm:$0xff]  }
  0x35   : > { %v2849_v58 = vunpack.c.h.bf16 %v3019_v47  ;;  %v2976_v59 = vunpack.c.l.bf16 %v3049_v48  ;;  %v2977_v60 = vunpack.c.h.bf16 %v3049_v48  ;;  %v704_v24 = vmul.f32 %v2844_v50, %v3657_v35 }
  0x36   : > { %v1379_v61 = vmul.f32 %v2972_v53, %v3660_v36  ;;  %v1380_v62 = vmul.f32 %v2973_v54, %v3660_v36  ;;  %v706_v63 = vmul.f32 %v2848_v55, %v3657_v35  ;;  %v2852_v4 = vunpack.c.l.bf16 %v3020_v0 }
  0x37   : > { %v707_v3 = vmul.f32 %v2849_v58, %v3657_v35  ;;  %v1381_v6 = vmul.f32 %v2976_v59, %v3660_v36  ;;  %v1382_v7 = vmul.f32 %v2977_v60, %v3660_v36  ;;  %v2853_v9 = vunpack.c.h.bf16 %v3020_v0  ;;  %v3055_v58 = vld [vmem:[%s3639_s21 + $0x60] sm:$0xff]  }
  0x38   : > { %v2980_v10 = vunpack.c.l.bf16 %v3050_v1  ;;  %v2981_v11 = vunpack.c.h.bf16 %v3050_v1  ;;  %v1406_v13 = vpack.c.bf16 %v1380_v62, %v1379_v61  ;;  %v2856_v14 = vunpack.c.l.bf16 %v3021_v8 }
  0x39   : > { %v2857_v15 = vunpack.c.h.bf16 %v3021_v8  ;;  %v732_v16 = vpack.c.bf16 %v707_v3, %v706_v63  ;;  %v1407_v17 = vpack.c.bf16 %v1382_v7, %v1381_v6  ;;  %v2984_v18 = vunpack.c.l.bf16 %v3051_v2 }
  0x3a   : > { %v2985_v19 = vunpack.c.h.bf16 %v3051_v2  ;;  %v708_v20 = vmul.f32 %v2852_v4, %v3657_v35  ;;  %v709_v21 = vmul.f32 %v2853_v9, %v3657_v35  ;;  %v1383_v22 = vmul.f32 %v2980_v10, %v3660_v36 }
  0x3b   : > { %3184 = vmatmul.mubr.msk.bf16.vlgmr.msra.gmra.mxu1 %vm872_vm0, %v727_v27  ;;  %3218 = vmatmul.mubr.msk.bf16.vlgmr.msra.gmra.mxu0 %vm872_vm0, %v1402_v28  ;;  %v1384_v23 = vmul.f32 %v2981_v11, %v3660_v36  ;;  %v710_v25 = vmul.f32 %v2856_v14, %v3657_v35  ;;  %v711_v26 = vmul.f32 %v2857_v15, %v3657_v35  ;;  %v3022_v27 = vld [vmem:[%s3633_s18 + $0x48] sm:$0xff]   ;;  %v2988_v40 = vunpack.c.l.bf16 %v3052_v30 }
  0x3c   : > { %3187 = vmatprep.mubr.msk.bf16.mxu1 %vm872_vm0, %v728_v31  ;;  %3221 = vmatprep.mubr.msk.bf16.mxu0 %vm872_vm0, %v1403_v32  ;;  %v1385_v28 = vmul.f32 %v2984_v18, %v3660_v36  ;;  %v1386_v29 = vmul.f32 %v2985_v19, %v3660_v36  ;;  %v3023_v31 = vld [vmem:[%s3633_s18 + $0x50] sm:$0xff]   ;;  %v733_v33 = vpack.c.bf16 %v709_v21, %v708_v20  ;;  %v2860_v37 = vunpack.c.l.bf16 %v3022_v27  ;;  %v3056_v15 = vld [vmem:[%s3639_s21 + $0x68] sm:$0xff]  }
  0x3d   : > { %3250 = vmatpush3.bf16.msra.mxu1 %v3610_v56  ;;  %v705_v56 = vmul.f32 %v2845_v51, %v3657_v35  ;;  %v3053_v32 = vld [vmem:[%s3639_s21 + $0x50] sm:$0xff]   ;;  %v1408_v34 = vpack.c.bf16 %v1384_v23, %v1383_v22  ;;  %v2861_v38 = vunpack.c.h.bf16 %v3022_v27  ;;  %v734_v39 = vpack.c.bf16 %v711_v26, %v710_v25  ;;  %v3024_v51 = vld [vmem:[%s3633_s18 + $0x58] sm:$0xff]  }
  0x3e   : > { %v2989_v41 = vunpack.c.h.bf16 %v3052_v30  ;;  %v2864_v42 = vunpack.c.l.bf16 %v3023_v31  ;;  %v1409_v43 = vpack.c.bf16 %v1386_v29, %v1385_v28  ;;  %v2865_v44 = vunpack.c.h.bf16 %v3023_v31 }
  0x3f   : > { %v731_v12 = vpack.c.bf16 %v705_v56, %v704_v24  ;;  %v2992_v45 = vunpack.c.l.bf16 %v3053_v32  ;;  %v2993_v46 = vunpack.c.h.bf16 %v3053_v32  ;;  %v712_v47 = vmul.f32 %v2860_v37, %v3657_v35 }
  0x40   : > { %v713_v48 = vmul.f32 %v2861_v38, %v3657_v35  ;;  %v714_v50 = vmul.f32 %v2864_v42, %v3657_v35  ;;  %v715_v53 = vmul.f32 %v2865_v44, %v3657_v35  ;;  %v2868_v59 = vunpack.c.l.bf16 %v3024_v51  ;;  %v3028_v38 = vld [vmem:[%s3633_s18 + $0x78] sm:$0xff]  }
  0x41   : > { %v1389_v54 = vmul.f32 %v2992_v45, %v3660_v36  ;;  %v1390_v55 = vmul.f32 %v2993_v46, %v3660_v36  ;;  %v2869_v60 = vunpack.c.h.bf16 %v3024_v51  ;;  %v3000_v6 = vunpack.c.l.bf16 %v3055_v58  ;;  %v3058_v42 = vld [vmem:[%s3639_s21 + $0x78] sm:$0xff]  }
  0x42   : > { %v735_v61 = vpack.c.bf16 %v713_v48, %v712_v47  ;;  %v736_v1 = vpack.c.bf16 %v715_v53, %v714_v50  ;;  %v3001_v7 = vunpack.c.h.bf16 %v3055_v58  ;;  %v716_v8 = vmul.f32 %v2868_v59, %v3657_v35 }
  0x43   : > { %3188 = vmatmul.mubr.msk.bf16.gmra.mxu1 %vm872_vm0, %v729_v49  ;;  %3222 = vmatmul.mubr.msk.bf16.gmra.mxu0 %vm872_vm0, %v1404_v5  ;;  %v1387_v49 = vmul.f32 %v2988_v40, %v3660_v36  ;;  %v1388_v5 = vmul.f32 %v2989_v41, %v3660_v36  ;;  %v1411_v3 = vpack.c.bf16 %v1390_v55, %v1389_v54  ;;  %v3004_v23 = vunpack.c.l.bf16 %v3056_v15 }
  0x44   : > { %3191 = vmatprep.mubr.msk.bf16.mxu1 %vm872_vm0, %v730_v52  ;;  %3225 = vmatprep.mubr.msk.bf16.mxu0 %vm872_vm0, %v1405_v57  ;;  %v3054_v52 = vld [vmem:[%s3639_s21 + $0x58] sm:$0xff]   ;;  %v3025_v57 = vld [vmem:[%s3633_s18 + $0x60] sm:$0xff]   ;;  %v717_v2 = vmul.f32 %v2869_v60, %v3657_v35  ;;  %v1394_v14 = vmul.f32 %v3001_v7, %v3660_v36  ;;  %v3005_v25 = vunpack.c.h.bf16 %v3056_v15  ;;  %v2884_v44 = vunpack.c.l.bf16 %v3028_v38 }
  0x45   : > { %v2996_v24 = vunpack.c.l.bf16 %v3054_v52  ;;  %v2997_v56 = vunpack.c.h.bf16 %v3054_v52  ;;  %v1410_v62 = vpack.c.bf16 %v1388_v5, %v1387_v49  ;;  %v2872_v63 = vunpack.c.l.bf16 %v3025_v57 }
  0x46   : > { %v2873_v0 = vunpack.c.h.bf16 %v3025_v57  ;;  %v737_v18 = vpack.c.bf16 %v717_v2, %v716_v8  ;;  %v2885_v46 = vunpack.c.h.bf16 %v3028_v38  ;;  %v3012_v47 = vunpack.c.l.bf16 %v3058_v42  ;;  %v3353_v57 = vld [vmem:[%s4488_s12 + $0x18] sm:$0xff]  }
  0x47   : > { %v1391_v4 = vmul.f32 %v2996_v24, %v3660_v36  ;;  %v1392_v9 = vmul.f32 %v2997_v56, %v3660_v36  ;;  %v718_v10 = vmul.f32 %v2872_v63, %v3657_v35  ;;  %v3013_v48 = vunpack.c.h.bf16 %v3058_v42  ;;  %3283 = vmatprep.subr.bf16.mxu0 %v3353_v57 }
  0x48   : > { %v719_v11 = vmul.f32 %v2873_v0, %v3657_v35  ;;  %v724_v50 = vmul.f32 %v2884_v44, %v3657_v35  ;;  %v725_v51 = vmul.f32 %v2885_v46, %v3657_v35  ;;  %v1399_v52 = vmul.f32 %v3012_v47, %v3660_v36  ;;  %3284 = vmatpush3.bf16.msra.mxu0 %v3353_v57  ;;  %v3855_v44 = vld [vmem:[%s4485_s9] ss:$0 sm:$0xff] }
  0x49   : > { %v1412_v19 = vpack.c.bf16 %v1392_v9, %v1391_v4  ;;  %v1400_v53 = vmul.f32 %v3013_v48, %v3660_v36 }
  0x4a   : > { %v738_v22 = vpack.c.bf16 %v719_v11, %v718_v10  ;;  %v741_v54 = vpack.c.bf16 %v725_v51, %v724_v50 }
  0x4b   : > { %3192 = vmatmul.mubr.msk.bf16.gmra.mxu1 %vm872_vm0, %v731_v12  ;;  %3226 = vmatmul.mubr.msk.bf16.gmra.mxu0 %vm872_vm0, %v1406_v13  ;;  %v3026_v12 = vld [vmem:[%s3633_s18 + $0x68] sm:$0xff]   ;;  %v1393_v13 = vmul.f32 %v3000_v6, %v3660_v36  ;;  %v1416_v55 = vpack.c.bf16 %v1400_v53, %v1399_v52 }
  0x4c   : > { %3195 = vmatprep.mubr.msk.bf16.mxu1 %vm872_vm0, %v732_v16  ;;  %3229 = vmatprep.mubr.msk.bf16.mxu0 %vm872_vm0, %v1407_v17  ;;  %v3027_v16 = vld [vmem:[%s3633_s18 + $0x70] sm:$0xff]   ;;  %v2876_v20 = vunpack.c.l.bf16 %v3026_v12  ;;  %v2877_v21 = vunpack.c.h.bf16 %v3026_v12 }
  0x4d   : > { %v3057_v17 = vld [vmem:[%s3639_s21 + $0x70] sm:$0xff]   ;;  %v2880_v26 = vunpack.c.l.bf16 %v3027_v16  ;;  %v1413_v27 = vpack.c.bf16 %v1394_v14, %v1393_v13  ;;  %v2881_v28 = vunpack.c.h.bf16 %v3027_v16 }
  0x4e   : > { %v3008_v29 = vunpack.c.l.bf16 %v3057_v17  ;;  %v3009_v30 = vunpack.c.h.bf16 %v3057_v17  ;;  %v720_v31 = vmul.f32 %v2876_v20, %v3657_v35  ;;  %v721_v32 = vmul.f32 %v2877_v21, %v3657_v35 }
  0x4f   : > { %v722_v37 = vmul.f32 %v2880_v26, %v3657_v35 }
  0x50   : > { %v1397_v40 = vmul.f32 %v3008_v29, %v3660_v36  ;;  %v1398_v41 = vmul.f32 %v3009_v30, %v3660_v36 }
  0x52   : > { %v1415_v5 = vpack.c.bf16 %v1398_v41, %v1397_v40 }
  0x53   : > { %3196 = vmatmul.mubr.msk.bf16.gmra.mxu1 %vm872_vm0, %v733_v33  ;;  %3230 = vmatmul.mubr.msk.bf16.gmra.mxu0 %vm872_vm0, %v1408_v34  ;;  %v1395_v33 = vmul.f32 %v3004_v23, %v3660_v36  ;;  %v1396_v34 = vmul.f32 %v3005_v25, %v3660_v36 }
  0x54   : > { %3199 = vmatprep.mubr.msk.bf16.mxu1 %vm872_vm0, %v734_v39  ;;  %3233 = vmatprep.mubr.msk.bf16.mxu0 %vm872_vm0, %v1409_v43  ;;  %v723_v39 = vmul.f32 %v2881_v28, %v3657_v35  ;;  %v739_v43 = vpack.c.bf16 %v721_v32, %v720_v31  ;;  %v3354_v35 = vld [vmem:[%s4488_s12 + $0x10] sm:$0xff]  }
  0x55   : > { %v1414_v45 = vpack.c.bf16 %v1396_v34, %v1395_v33  ;;  %3285 = vmatprep.subr.bf16.mxu0 %v3354_v35 }
  0x56   : > { %v740_v49 = vpack.c.bf16 %v723_v39, %v722_v37  ;;  %3286 = vmatpush3.bf16.msra.mxu0 %v3354_v35 }
  0x5b   : > { %3200 = vmatmul.mubr.msk.bf16.gmra.mxu1 %vm872_vm0, %v735_v61  ;;  %3234 = vmatmul.mubr.msk.bf16.gmra.mxu0 %vm872_vm0, %v1410_v62 }
  0x5c   : > { %3203 = vmatprep.mubr.msk.bf16.mxu1 %vm872_vm0, %v736_v1  ;;  %3237 = vmatprep.mubr.msk.bf16.mxu0 %vm872_vm0, %v1411_v3 }
  0x63   : > { %3204 = vmatmul.mubr.msk.bf16.gmra.mxu1 %vm872_vm0, %v737_v18  ;;  %3238 = vmatmul.mubr.msk.bf16.gmra.mxu0 %vm872_vm0, %v1412_v19 }
  0x64   : > { %3207 = vmatprep.mubr.msk.bf16.mxu1 %vm872_vm0, %v738_v22  ;;  %3241 = vmatprep.mubr.msk.bf16.mxu0 %vm872_vm0, %v1413_v27 }
  0x6b   : > { %3208 = vmatmul.mubr.msk.bf16.gmra.mxu1 %vm872_vm0, %v739_v43  ;;  %3242 = vmatmul.mubr.msk.bf16.gmra.mxu0 %vm872_vm0, %v1414_v45 }
  0x6c   : > { %3211 = vmatprep.mubr.msk.bf16.mxu1 %vm872_vm0, %v740_v49  ;;  %3245 = vmatprep.mubr.msk.bf16.mxu0 %vm872_vm0, %v1415_v5 }
  0x73   : > { %3212 = vmatmul.mubr.msk.bf16.gmra.mxu1 %vm872_vm0, %v741_v54  ;;  %3246 = vmatmul.mubr.msk.bf16.gmra.mxu0 %vm872_vm0, %v1416_v55 }
  0xdb   : > { %v3151_v36 = vpop.f32.mrf.mxu0  ;;  %v3806_v58 = vpop.f32.mrf.mxu1 }
  0xdd   : > { %v955_v59 = vpop.f32.mrf.mxu0  ;;  %v3808_v60 = vpop.f32.mrf.mxu1 }
  0xdf   : > { %v3152_v24 = vpop.f32.mrf.mxu0  ;;  %v3810_v56 = vpop.f32.mrf.mxu1 }
  0xe1   : > { %v958_v61 = vpop.f32.mrf.mxu0  ;;  %v3812_v62 = vpop.f32.mrf.mxu1 }
  0xe3   : > { %v3155_v63 = vpop.f32.mrf.mxu0  ;;  %v3814_v0 = vpop.f32.mrf.mxu1 }
  0xe5   : > { %v971_v1 = vpop.f32.mrf.mxu0  ;;  %v3816_v3 = vpop.f32.mrf.mxu1 }
  0xe7   : > { %v3156_v6 = vpop.f32.mrf.mxu0  ;;  %v3818_v7 = vpop.f32.mrf.mxu1 }
  0xe9   : > { %v974_v8 = vpop.f32.mrf.mxu0  ;;  %v3820_v2 = vpop.f32.mrf.mxu1 }
  0xeb   : > { %v3822_v4 = vpop.f32.mrf.mxu0  ;;  %v3824_v9 = vpop.f32.mrf.mxu1 }
  0xed   : > { %v987_v10 = vpop.f32.mrf.mxu0  ;;  %v3826_v11 = vpop.f32.mrf.mxu1 }
  0xef   : > { %v3828_v12 = vpop.f32.mrf.mxu0  ;;  %v3830_v13 = vpop.f32.mrf.mxu1 }
  0xf1   : > { %v3832_v14 = vpop.f32.mrf.mxu0  ;;  %v3834_v15 = vpop.f32.mrf.mxu1 }
  0xf3   : > { %v3836_v16 = vpop.f32.mrf.mxu0  ;;  %v3838_v17 = vpop.f32.mrf.mxu1 }
  0xf5   : > { %v3840_v18 = vpop.f32.mrf.mxu0  ;;  %v3842_v19 = vpop.f32.mrf.mxu1 }
  0xf7   : > { %v3844_v20 = vpop.f32.mrf.mxu0  ;;  %v3846_v21 = vpop.f32.mrf.mxu1 }
  0xf9   : > { %v3848_v22 = vpop.f32.mrf.mxu0  ;;  %v3850_v23 = vpop.f32.mrf.mxu1 }
  0xfb   : > { %v3185_v25 = vpop.f32.mrf.mxu1  ;;  %v3219_v26 = vpop.f32.mrf.mxu0 }
  0xfc   : > { %v1179_v30 = vadd.f32 %v3185_v25, %v3151_v36 }
  0xfd   : > { %v1170_v27 = vpop.f32.mrf.mxu1  ;;  %v1507_v28 = vpop.f32.mrf.mxu0 }
  0xfe   : > { %v1171_v29 = vadd.f32 %v1170_v27, %v955_v59  ;;  %v1636_v41 = vadd.f32 %v3219_v26, %v1179_v30 }
  0xff   : > { %v3186_v31 = vpop.f32.mrf.mxu1  ;;  %v3220_v32 = vpop.f32.mrf.mxu0 }
 0x100   : > { %v1182_v33 = vadd.f32 %v3186_v31, %v3152_v24  ;;  %v1634_v38 = vadd.f32 %v1507_v28, %v1171_v29  ;;  %v3867_v51 = vadd.f32 %v3855_v44, %v1636_v41 }
 0x101   : > { %v1173_v34 = vpop.f32.mrf.mxu1  ;;  %v1510_v37 = vpop.f32.mrf.mxu0 }
 0x102   : > { %v1637_v39 = vadd.f32 %v3220_v32, %v1182_v33  ;;  %v1174_v40 = vadd.f32 %v1173_v34, %v958_v61  ;;  %v3861_v49 = vadd.f32 %v3855_v44, %v1634_v38 }
 0x103   : > { %v3189_v42 = vpop.f32.mrf.mxu1  ;;  %v3223_v43 = vpop.f32.mrf.mxu0 }
 0x104   : > { %v1635_v45 = vadd.f32 %v1510_v37, %v1174_v40  ;;  %v3858_v46 = vadd.f32 %v3855_v44, %v1637_v39  ;;  %v1195_v52 = vadd.f32 %v3189_v42, %v3155_v63 }
 0x105   : > { %v1186_v47 = vpop.f32.mrf.mxu1  ;;  %v1523_v48 = vpop.f32.mrf.mxu0 }
 0x106   : > { %v3864_v5 = vadd.f32 %v3855_v44, %v1635_v45  ;;  %v1187_v50 = vadd.f32 %v1186_v47, %v971_v1  ;;  %v1706_v35 = vpack.c.bf16 %v3858_v46, %v3867_v51  ;;  %v1640_v1 = vadd.f32 %v3223_v43, %v1195_v52 }
 0x107   : > { %v3190_v53 = vpop.f32.mrf.mxu1  ;;  %v3224_v54 = vpop.f32.mrf.mxu0 }
 0x108   : > { %v1705_v55 = vpack.c.bf16 %v3864_v5, %v3861_v49  ;;  %v1198_v57 = vadd.f32 %v3190_v53, %v3156_v6  ;;  %v1638_v24 = vadd.f32 %v1523_v48, %v1187_v50  ;;  %v3885_v32 = vadd.f32 %v3855_v44, %v1640_v1 }
 0x109   : > { %v1189_v36 = vpop.f32.mrf.mxu1  ;;  %v1526_v59 = vpop.f32.mrf.mxu0 }
 0x10a   : > { %v1641_v61 = vadd.f32 %v3224_v54, %v1198_v57  ;;  %v1190_v25 = vadd.f32 %v1189_v36, %v974_v8  ;;  %3251 = vmatprep.mubr.msk.bf16.mxu1 %vm872_vm0, %v1705_v55  ;;  %v3879_v30 = vadd.f32 %v3855_v44, %v1638_v24 }
 0x10b   : > { %v3193_v26 = vpop.f32.mrf.mxu1  ;;  %v3227_v27 = vpop.f32.mrf.mxu0  ;;  %3252 = vmatmul.mubr.msk.bf16.vlgmr.msra.gmra.mxu1 %vm872_vm0, %v1706_v35 }
 0x10c   : > { %v1639_v63 = vadd.f32 %v1526_v59, %v1190_v25  ;;  %v3876_v28 = vadd.f32 %v3855_v44, %v1641_v61  ;;  %v1211_v33 = vadd.f32 %v3193_v26, %v3822_v4 }
 0x10d   : > { %v1202_v6 = vpop.f32.mrf.mxu1  ;;  %v1539_v29 = vpop.f32.mrf.mxu0 }
 0x10e   : > { %v3882_v31 = vadd.f32 %v3855_v44, %v1639_v63  ;;  %v1203_v8 = vadd.f32 %v1202_v6, %v987_v10  ;;  %v1708_v40 = vpack.c.bf16 %v3876_v28, %v3885_v32  ;;  %v1644_v47 = vadd.f32 %v3227_v27, %v1211_v33 }
 0x10f   : > { %v3194_v34 = vpop.f32.mrf.mxu1  ;;  %v3228_v37 = vpop.f32.mrf.mxu0 }
 0x110   : > { %v1707_v38 = vpack.c.bf16 %v3882_v31, %v3879_v30  ;;  %v1214_v39 = vadd.f32 %v3194_v34, %v3828_v12  ;;  %v1642_v43 = vadd.f32 %v1539_v29, %v1203_v8  ;;  %v3907_v57 = vadd.f32 %v3855_v44, %v1644_v47 }
 0x111   : > { %v1205_v41 = vpop.f32.mrf.mxu1  ;;  %v1542_v42 = vpop.f32.mrf.mxu0 }
 0x112   : > { %v1645_v45 = vadd.f32 %v3228_v37, %v1214_v39  ;;  %v1206_v10 = vadd.f32 %v1205_v41, %v3832_v14  ;;  %3255 = vmatprep.mubr.msk.bf16.mxu1 %vm872_vm0, %v1707_v38  ;;  %v3900_v54 = vadd.f32 %v3855_v44, %v1642_v43 }
 0x113   : > { %v3197_v4 = vpop.f32.mrf.mxu1  ;;  %v3231_v48 = vpop.f32.mrf.mxu0  ;;  %3256 = vmatmul.mubr.msk.bf16.gmra.mxu1 %vm872_vm0, %v1708_v40 }
 0x114   : > { %v1643_v50 = vadd.f32 %v1542_v42, %v1206_v10  ;;  %v3897_v52 = vadd.f32 %v3855_v44, %v1645_v45  ;;  %v1227_v35 = vadd.f32 %v3197_v4, %v3836_v16 }
 0x115   : > { %v1218_v12 = vpop.f32.mrf.mxu1  ;;  %v1555_v53 = vpop.f32.mrf.mxu0 }
 0x116   : > { %v3903_v55 = vadd.f32 %v3855_v44, %v1643_v50  ;;  %v1219_v14 = vadd.f32 %v1218_v12, %v3840_v18  ;;  %v1710_v25 = vpack.c.bf16 %v3897_v52, %v3907_v57  ;;  %v1648_v6 = vadd.f32 %v3231_v48, %v1227_v35 }
 0x117   : > { %v3198_v36 = vpop.f32.mrf.mxu1  ;;  %v3232_v59 = vpop.f32.mrf.mxu0 }
 0x118   : > { %v1709_v24 = vpack.c.bf16 %v3903_v55, %v3900_v54  ;;  %v1230_v61 = vadd.f32 %v3198_v36, %v3844_v20  ;;  %v1646_v27 = vadd.f32 %v1555_v53, %v1219_v14  ;;  %v3929_v39 = vadd.f32 %v3855_v44, %v1648_v6 }
 0x119   : > { %v1221_v1 = vpop.f32.mrf.mxu1  ;;  %v1558_v26 = vpop.f32.mrf.mxu0 }
 0x11a   : > { %v1649_v63 = vadd.f32 %v3232_v59, %v1230_v61  ;;  %v1222_v18 = vadd.f32 %v1221_v1, %v3848_v22  ;;  %3259 = vmatprep.mubr.msk.bf16.mxu1 %vm872_vm0, %v1709_v24  ;;  %v3922_v37 = vadd.f32 %v3855_v44, %v1646_v27  ;;  %4514 = vst [vmem:[#allocation5_spill] sm:$0xff] %v3929_v39 }
 0x11b   : > { %v3201_v16 = vpop.f32.mrf.mxu1  ;;  %v3235_v29 = vpop.f32.mrf.mxu0  ;;  %3260 = vmatmul.mubr.msk.bf16.gmra.mxu1 %vm872_vm0, %v1710_v25 }
 0x11c   : > { %v1647_v8 = vadd.f32 %v1558_v26, %v1222_v18  ;;  %v3919_v33 = vadd.f32 %v3855_v44, %v1649_v63  ;;  %4512 = vst [vmem:[#allocation3_spill] sm:$0xff] %v3922_v37  ;;  %v1243_v40 = vadd.f32 %v3201_v16, %v3806_v58 }
 0x11d   : > { %v1234_v20 = vpop.f32.mrf.mxu1  ;;  %v1571_v34 = vpop.f32.mrf.mxu0 }
 0x11e   : > { %4511 = vst [vmem:[#allocation2_spill] sm:$0xff] %v3919_v33  ;;  %v3925_v38 = vadd.f32 %v3855_v44, %v1647_v8  ;;  %v1235_v22 = vadd.f32 %v1234_v20, %v3808_v60  ;;  %v1712_v10 = vpack.c.bf16 %v3919_v33, %v3929_v39  ;;  %v1652_v12 = vadd.f32 %v3235_v29, %v1243_v40 }
 0x11f   : > { %v3202_v41 = vpop.f32.mrf.mxu1  ;;  %v3236_v42 = vpop.f32.mrf.mxu0 }
 0x120   : > { %4513 = vst [vmem:[#allocation4_spill] sm:$0xff] %v3925_v38  ;;  %v1711_v43 = vpack.c.bf16 %v3925_v38, %v3922_v37  ;;  %v1246_v45 = vadd.f32 %v3202_v41, %v3810_v56  ;;  %v1650_v48 = vadd.f32 %v1571_v34, %v1235_v22  ;;  %v3951_v61 = vadd.f32 %v3855_v44, %v1652_v12 }
 0x121   : > { %v1237_v47 = vpop.f32.mrf.mxu1  ;;  %v1574_v4 = vpop.f32.mrf.mxu0 }
 0x122   : > { %v1653_v50 = vadd.f32 %v3236_v42, %v1246_v45  ;;  %v1238_v60 = vadd.f32 %v1237_v47, %v3812_v62  ;;  %3263 = vmatprep.mubr.msk.bf16.mxu1 %vm872_vm0, %v1711_v43  ;;  %v3944_v59 = vadd.f32 %v3855_v44, %v1650_v48  ;;  %4518 = vst [vmem:[#allocation9_spill] sm:$0xff] %v3951_v61 }
 0x123   : > { %v3205_v58 = vpop.f32.mrf.mxu1  ;;  %v3239_v53 = vpop.f32.mrf.mxu0  ;;  %3264 = vmatmul.mubr.msk.bf16.gmra.mxu1 %vm872_vm0, %v1712_v10 }
 0x124   : > { %v1651_v14 = vadd.f32 %v1574_v4, %v1238_v60  ;;  %v3941_v35 = vadd.f32 %v3855_v44, %v1653_v50  ;;  %4516 = vst [vmem:[#allocation7_spill] sm:$0xff] %v3944_v59  ;;  %v1259_v25 = vadd.f32 %v3205_v58, %v3814_v0 }
 0x125   : > { %v1250_v56 = vpop.f32.mrf.mxu1  ;;  %v1587_v36 = vpop.f32.mrf.mxu0 }
 0x126   : > { %4515 = vst [vmem:[#allocation6_spill] sm:$0xff] %v3941_v35  ;;  %v3947_v24 = vadd.f32 %v3855_v44, %v1651_v14  ;;  %v1251_v62 = vadd.f32 %v1250_v56, %v3816_v3  ;;  %v1714_v18 = vpack.c.bf16 %v3941_v35, %v3951_v61  ;;  %v1656_v20 = vadd.f32 %v3239_v53, %v1259_v25 }
 0x127   : > { %v3206_v1 = vpop.f32.mrf.mxu1  ;;  %v3240_v26 = vpop.f32.mrf.mxu0 }
 0x128   : > { %4517 = vst [vmem:[#allocation8_spill] sm:$0xff] %v3947_v24  ;;  %v1713_v27 = vpack.c.bf16 %v3947_v24, %v3944_v59  ;;  %v1262_v63 = vadd.f32 %v3206_v1, %v3818_v7  ;;  %v1654_v29 = vadd.f32 %v1587_v36, %v1251_v62  ;;  %v3973_v45 = vadd.f32 %v3855_v44, %v1656_v20 }
 0x129   : > { %v1253_v6 = vpop.f32.mrf.mxu1  ;;  %v1590_v16 = vpop.f32.mrf.mxu0 }
 0x12a   : > { %v1657_v8 = vadd.f32 %v3240_v26, %v1262_v63  ;;  %v1254_v3 = vadd.f32 %v1253_v6, %v3820_v2  ;;  %3267 = vmatprep.mubr.msk.bf16.mxu1 %vm872_vm0, %v1713_v27  ;;  %v3966_v42 = vadd.f32 %v3855_v44, %v1654_v29  ;;  %4522 = vst [vmem:[#allocation13_spill] sm:$0xff] %v3973_v45 }
 0x12b   : > { %v3209_v0 = vpop.f32.mrf.mxu1  ;;  %v3243_v34 = vpop.f32.mrf.mxu0  ;;  %3268 = vmatmul.mubr.msk.bf16.gmra.mxu1 %vm872_vm0, %v1714_v18 }
 0x12c   : > { %v1655_v22 = vadd.f32 %v1590_v16, %v1254_v3  ;;  %v3963_v40 = vadd.f32 %v3855_v44, %v1657_v8  ;;  %4520 = vst [vmem:[#allocation11_spill] sm:$0xff] %v3966_v42  ;;  %v1275_v10 = vadd.f32 %v3209_v0, %v3824_v9 }
 0x12d   : > { %v1266_v7 = vpop.f32.mrf.mxu1  ;;  %v1603_v41 = vpop.f32.mrf.mxu0 }
 0x12e   : > { %4519 = vst [vmem:[#allocation10_spill] sm:$0xff] %v3963_v40  ;;  %v3969_v43 = vadd.f32 %v3855_v44, %v1655_v22  ;;  %v1267_v2 = vadd.f32 %v1266_v7, %v3826_v11  ;;  %v1716_v60 = vpack.c.bf16 %v3963_v40, %v3973_v45  ;;  %v1660_v56 = vadd.f32 %v3243_v34, %v1275_v10 }
 0x12f   : > { %v3210_v47 = vpop.f32.mrf.mxu1  ;;  %v3244_v4 = vpop.f32.mrf.mxu0 }
 0x130   : > { %4521 = vst [vmem:[#allocation12_spill] sm:$0xff] %v3969_v43  ;;  %v1715_v48 = vpack.c.bf16 %v3969_v43, %v3966_v42  ;;  %v1278_v50 = vadd.f32 %v3210_v47, %v3830_v13  ;;  %v1658_v53 = vadd.f32 %v1603_v41, %v1267_v2  ;;  %v3995_v63 = vadd.f32 %v3855_v44, %v1660_v56 }
 0x131   : > { %v1269_v12 = vpop.f32.mrf.mxu1  ;;  %v1606_v58 = vpop.f32.mrf.mxu0 }
 0x132   : > { %v1661_v14 = vadd.f32 %v3244_v4, %v1278_v50  ;;  %v1270_v11 = vadd.f32 %v1269_v12, %v3834_v15  ;;  %3271 = vmatprep.mubr.msk.bf16.mxu1 %vm872_vm0, %v1715_v48  ;;  %v3988_v26 = vadd.f32 %v3855_v44, %v1658_v53  ;;  %4526 = vst [vmem:[#allocation17_spill] sm:$0xff] %v3995_v63  ;;  %v3355_v4 = vld [vmem:[%s4488_s12 + $0x8] sm:$0xff]   ;;  %v4033_v48 = vld [vmem:[%s4487_s11] ss:$0 sm:$0xff] }
 0x133   : > { %v3213_v9 = vpop.f32.mrf.mxu1  ;;  %v3247_v36 = vpop.f32.mrf.mxu0  ;;  %3272 = vmatmul.mubr.msk.bf16.gmra.mxu1 %vm872_vm0, %v1716_v60  ;;  %3287 = vmatprep.subr.bf16.mxu0 %v3355_v4 }
 0x134   : > { %v1659_v62 = vadd.f32 %v1606_v58, %v1270_v11  ;;  %v3985_v25 = vadd.f32 %v3855_v44, %v1661_v14  ;;  %4524 = vst [vmem:[#allocation15_spill] sm:$0xff] %v3988_v26  ;;  %v1291_v18 = vadd.f32 %v3213_v9, %v3838_v17  ;;  %3288 = vmatpush3.bf16.msra.mxu0 %v3355_v4 }
 0x135   : > { %v1282_v13 = vpop.f32.mrf.mxu1  ;;  %v1619_v1 = vpop.f32.mrf.mxu0 }
 0x136   : > { %4523 = vst [vmem:[#allocation14_spill] sm:$0xff] %v3985_v25  ;;  %v3991_v27 = vadd.f32 %v3855_v44, %v1659_v62  ;;  %v1283_v15 = vadd.f32 %v1282_v13, %v3842_v19  ;;  %v1718_v3 = vpack.c.bf16 %v3985_v25, %v3995_v63  ;;  %v1664_v22 = vadd.f32 %v3247_v36, %v1291_v18 }
 0x137   : > { %v3214_v6 = vpop.f32.mrf.mxu1  ;;  %v3248_v16 = vpop.f32.mrf.mxu0 }
 0x138   : > { %4525 = vst [vmem:[#allocation16_spill] sm:$0xff] %v3991_v27  ;;  %v1717_v29 = vpack.c.bf16 %v3991_v27, %v3988_v26  ;;  %v1294_v8 = vadd.f32 %v3214_v6, %v3846_v21  ;;  %v1662_v0 = vadd.f32 %v1619_v1, %v1283_v15  ;;  %v4016_v10 = vadd.f32 %v3855_v44, %v1664_v22 }
 0x139   : > { %v1285_v20 = vpop.f32.mrf.mxu1  ;;  %v1622_v7 = vpop.f32.mrf.mxu0 }
 0x13a   : > { %v1665_v34 = vadd.f32 %v3248_v16, %v1294_v8  ;;  %v1286_v19 = vadd.f32 %v1285_v20, %v3850_v23  ;;  %3275 = vmatprep.mubr.msk.bf16.mxu1 %vm872_vm0, %v1717_v29  ;;  %v4010_v21 = vadd.f32 %v3855_v44, %v1662_v0  ;;  %4530 = vst [vmem:[#allocation21_spill] sm:$0xff] %v4016_v10 }
 0x13b   : > { %3276 = vmatmul.mubr.msk.bf16.gmra.mxu1 %vm872_vm0, %v1718_v3 }
 0x13c   : > { %v1663_v17 = vadd.f32 %v1622_v7, %v1286_v19  ;;  %v4007_v41 = vadd.f32 %v3855_v44, %v1665_v34  ;;  %4528 = vst [vmem:[#allocation19_spill] sm:$0xff] %v4010_v21 }
 0x13e   : > { %4527 = vst [vmem:[#allocation18_spill] sm:$0xff] %v4007_v41  ;;  %v4013_v2 = vadd.f32 %v3855_v44, %v1663_v17  ;;  %v1720_v47 = vpack.c.bf16 %v4007_v41, %v4016_v10  ;;  %v3356_v44 = vld [vmem:[%s4488_s12] sm:$0xff]  }
 0x13f   : > { %3289 = vmatprep.subr.bf16.mxu0 %v3356_v44 }
 0x140   : > { %4529 = vst [vmem:[#allocation20_spill] sm:$0xff] %v4013_v2  ;;  %v1719_v23 = vpack.c.bf16 %v4013_v2, %v4010_v21  ;;  %3290 = vmatpush3.bf16.msra.mxu0 %v3356_v44 }
 0x142   : > { %3279 = vmatprep.mubr.msk.bf16.mxu1 %vm872_vm0, %v1719_v23 }
 0x143   : > { %3280 = vmatmul.mubr.msk.bf16.gmra.mxu1 %vm872_vm0, %v1720_v47 }
 0x1cb   : > { %v3253_v50 = vpop.f32.mrf.mxu1 }
 0x1cc   : > { %v4036_v60 = vadd.f32 %v3253_v50, %v4033_v48 }
 0x1cd   : > { %v1818_v12 = vpop.f32.mrf.mxu1 }
 0x1ce   : > { %v1947_v58 = vmul.f32 %v4036_v60, %v4036_v60  ;;  %v4041_v53 = vadd.f32 %v4033_v48, %v1818_v12 }
 0x1cf   : > { %v3254_v14 = vpop.f32.mrf.mxu1 }
 0x1d0   : > { %v1979_v11 = vmul.f32 %v1947_v58, %v4036_v60  ;;  %v1945_v56 = vmul.f32 %v4041_v53, %v4041_v53  ;;  %v4047_v9 = vadd.f32 %v3254_v14, %v4033_v48 }
 0x1d1   : > { %v1821_v36 = vpop.f32.mrf.mxu1 }
 0x1d2   : > { %v2011_v62 = vmul.f32 0.044715, %v1979_v11  ;;  %v1977_v13 = vmul.f32 %v1945_v56, %v4041_v53  ;;  %v1948_v1 = vmul.f32 %v4047_v9, %v4047_v9  ;;  %v4053_v15 = vadd.f32 %v4033_v48, %v1821_v36 }
 0x1d3   : > { %v3257_v18 = vpop.f32.mrf.mxu1 }
 0x1d4   : > { %v2043_v6 = vadd.f32 %v2011_v62, %v4036_v60  ;;  %v2009_v16 = vmul.f32 0.044715, %v1977_v13  ;;  %v1980_v29 = vmul.f32 %v1948_v1, %v4047_v9  ;;  %v1946_v8 = vmul.f32 %v4053_v15, %v4053_v15 }
 0x1d5   : > { %v4060_v3 = vadd.f32 %v3257_v18, %v4033_v48  ;;  %v1834_v20 = vpop.f32.mrf.mxu1 }
 0x1d6   : > { %v2075_v0 = vmul.f32 0.7978846, %v2043_v6  ;;  %v2041_v34 = vadd.f32 %v2009_v16, %v4041_v53  ;;  %v2012_v19 = vmul.f32 0.044715, %v1980_v29  ;;  %v1978_v22 = vmul.f32 %v1946_v8, %v4053_v15 }
 0x1d7   : > { %v1951_v7 = vmul.f32 %v4060_v3, %v4060_v3  ;;  %v4067_v17 = vadd.f32 %v4033_v48, %v1834_v20  ;;  %v3258_v23 = vpop.f32.mrf.mxu1 }
 0x1d8   : > { %3357 = vtanh.f32 %v2075_v0  ;;  %v2073_v47 = vmul.f32 0.7978846, %v2041_v34  ;;  %v2044_v4 = vadd.f32 %v2012_v19, %v4047_v9  ;;  %v2010_v44 = vmul.f32 0.044715, %v1978_v22 }
 0x1d9   : > { %v1983_v50 = vmul.f32 %v1951_v7, %v4060_v3  ;;  %v1949_v12 = vmul.f32 %v4067_v17, %v4067_v17  ;;  %v4074_v58 = vadd.f32 %v3258_v23, %v4033_v48  ;;  %v1837_v14 = vpop.f32.mrf.mxu1 }
 0x1da   : > { %3359 = vtanh.f32 %v2073_v47  ;;  %v2076_v11 = vmul.f32 0.7978846, %v2044_v4  ;;  %v2042_v56 = vadd.f32 %v2010_v44, %v4053_v15  ;;  %v4078_v36 = vadd.f32 %v4033_v48, %v1837_v14 }
 0x1db   : > { %v2015_v62 = vmul.f32 0.044715, %v1983_v50  ;;  %v1981_v13 = vmul.f32 %v1949_v12, %v4067_v17  ;;  %v1952_v1 = vmul.f32 %v4074_v58, %v4074_v58  ;;  %v3261_v18 = vpop.f32.mrf.mxu1 }
 0x1dc   : > { %3361 = vtanh.f32 %v2076_v11  ;;  %v2074_v6 = vmul.f32 0.7978846, %v2042_v56  ;;  %v1950_v16 = vmul.f32 %v4078_v36, %v4078_v36  ;;  %v4086_v29 = vadd.f32 %v3261_v18, %v4033_v48 }
 0x1dd   : > { %v2047_v8 = vadd.f32 %v2015_v62, %v4060_v3  ;;  %v2013_v20 = vmul.f32 0.044715, %v1981_v13  ;;  %v1984_v0 = vmul.f32 %v1952_v1, %v4074_v58  ;;  %v1850_v34 = vpop.f32.mrf.mxu1 }
 0x1de   : > { %3363 = vtanh.f32 %v2074_v6  ;;  %v1982_v19 = vmul.f32 %v1950_v16, %v4078_v36  ;;  %v1955_v22 = vmul.f32 %v4086_v29, %v4086_v29  ;;  %v4094_v7 = vadd.f32 %v4033_v48, %v1850_v34 }
 0x1df   : > { %v2079_v23 = vmul.f32 0.7978846, %v2047_v8  ;;  %v2045_v47 = vadd.f32 %v2013_v20, %v4067_v17  ;;  %v2016_v4 = vmul.f32 0.044715, %v1984_v0  ;;  %v3262_v44 = vpop.f32.mrf.mxu1 }
 0x1e0   : > { %v2014_v50 = vmul.f32 0.044715, %v1982_v19  ;;  %v1987_v12 = vmul.f32 %v1955_v22, %v4086_v29  ;;  %v1953_v14 = vmul.f32 %v4094_v7, %v4094_v7  ;;  %v4101_v11 = vadd.f32 %v3262_v44, %v4033_v48 }
 0x1e1   : > { %3365 = vtanh.f32 %v2079_v23  ;;  %v2077_v56 = vmul.f32 0.7978846, %v2045_v47  ;;  %v2048_v62 = vadd.f32 %v2016_v4, %v4074_v58  ;;  %v1853_v13 = vpop.f32.mrf.mxu1 }
 0x1e2   : > { %v2046_v1 = vadd.f32 %v2014_v50, %v4078_v36  ;;  %v2019_v18 = vmul.f32 0.044715, %v1987_v12  ;;  %v1985_v6 = vmul.f32 %v1953_v14, %v4094_v7  ;;  %v1956_v16 = vmul.f32 %v4101_v11, %v4101_v11 }
 0x1e3   : > { %3367 = vtanh.f32 %v2077_v56  ;;  %v2080_v8 = vmul.f32 0.7978846, %v2048_v62  ;;  %v4109_v20 = vadd.f32 %v4033_v48, %v1853_v13  ;;  %v3265_v0 = vpop.f32.mrf.mxu1 }
 0x1e4   : > { %v2078_v34 = vmul.f32 0.7978846, %v2046_v1  ;;  %v2051_v19 = vadd.f32 %v2019_v18, %v4086_v29  ;;  %v2017_v22 = vmul.f32 0.044715, %v1985_v6  ;;  %v1988_v23 = vmul.f32 %v1956_v16, %v4101_v11 }
 0x1e5   : > { %v3358_v47 = vpop.eup %3357  ;;  %3369 = vtanh.f32 %v2080_v8  ;;  %v1954_v4 = vmul.f32 %v4109_v20, %v4109_v20  ;;  %v4116_v44 = vadd.f32 %v3265_v0, %v4033_v48  ;;  %v1866_v50 = vpop.f32.mrf.mxu1 }
 0x1e6   : > { %3371 = vtanh.f32 %v2078_v34  ;;  %v2083_v12 = vmul.f32 0.7978846, %v2051_v19  ;;  %v2049_v14 = vadd.f32 %v2017_v22, %v4094_v7  ;;  %v2020_v62 = vmul.f32 0.044715, %v1988_v23 }
 0x1e7   : > { %v3360_v56 = vpop.eup %3359  ;;  %v1986_v13 = vmul.f32 %v1954_v4, %v4109_v20  ;;  %v1959_v1 = vmul.f32 %v4116_v44, %v4116_v44  ;;  %v4123_v18 = vadd.f32 %v4033_v48, %v1866_v50  ;;  %v3266_v6 = vpop.f32.mrf.mxu1  ;;  %v2139_v16 = vadd.f32 1.0, %v3358_v47 }
 0x1e8   : > { %3373 = vtanh.f32 %v2083_v12  ;;  %v2081_v8 = vmul.f32 0.7978846, %v2049_v14  ;;  %v2052_v34 = vadd.f32 %v2020_v62, %v4101_v11  ;;  %v2137_v2 = vadd.f32 1.0, %v3360_v56 }
 0x1e9   : > { %v3362_v0 = vpop.eup %3361  ;;  %v2018_v19 = vmul.f32 0.044715, %v1986_v13  ;;  %v1991_v22 = vmul.f32 %v1959_v1, %v4116_v44  ;;  %v1957_v23 = vmul.f32 %v4123_v18, %v4123_v18  ;;  %v1869_v4 = vpop.f32.mrf.mxu1  ;;  %v2171_v14 = vmul.f32 0.5, %v2139_v16 }
 0x1ea   : > { %3375 = vtanh.f32 %v2081_v8  ;;  %v2084_v21 = vmul.f32 0.7978846, %v2052_v34  ;;  %v2140_v27 = vadd.f32 1.0, %v3362_v0  ;;  %v4132_v13 = vadd.f32 %v3266_v6, %v4033_v48 }
 0x1eb   : > { %v3364_v41 = vpop.eup %3363  ;;  %v2050_v50 = vadd.f32 %v2018_v19, %v4109_v20  ;;  %v2023_v10 = vmul.f32 0.044715, %v1991_v22  ;;  %v1989_v47 = vmul.f32 %v1957_v23, %v4123_v18  ;;  %v3269_v12 = vpop.f32.mrf.mxu1  ;;  %v4138_v19 = vadd.f32 %v4033_v48, %v1869_v4 }
 0x1ec   : > { %v2138_v62 = vadd.f32 1.0, %v3364_v41  ;;  %3377 = vtanh.f32 %v2084_v21  ;;  %v1960_v34 = vmul.f32 %v4132_v13, %v4132_v13  ;;  %v2169_v22 = vmul.f32 0.5, %v2137_v2 }
 0x1ed   : > { %v2082_v1 = vmul.f32 0.7978846, %v2050_v50  ;;  %v2055_v25 = vadd.f32 %v2023_v10, %v4116_v44  ;;  %v2021_v56 = vmul.f32 0.044715, %v1989_v47  ;;  %v1882_v8 = vpop.f32.mrf.mxu1  ;;  %v1958_v10 = vmul.f32 %v4138_v19, %v4138_v19 }
 0x1ee   : > { %v3366_v26 = vpop.eup %3365  ;;  %v1992_v21 = vmul.f32 %v1960_v34, %v4132_v13  ;;  %v4145_v23 = vmul.f32 %v2171_v14, %v4036_v60  ;;  %v2172_v50 = vmul.f32 0.5, %v2140_v27  ;;  %v2170_v47 = vmul.f32 0.5, %v2138_v62 }
 0x1ef   : > { %3379 = vtanh.f32 %v2082_v1  ;;  %v2087_v16 = vmul.f32 0.7978846, %v2055_v25  ;;  %v2053_v41 = vadd.f32 %v2021_v56, %v4123_v18  ;;  %v3270_v6 = vpop.f32.mrf.mxu1  ;;  %v1990_v25 = vmul.f32 %v1958_v10, %v4138_v19 }
 0x1f0   : > { %v3368_v0 = vpop.eup %3367  ;;  %v2024_v2 = vmul.f32 0.044715, %v1992_v21  ;;  %v4149_v1 = vadd.f32 %v3269_v12, %v4033_v48  ;;  %v4152_v56 = vadd.f32 %v4033_v48, %v1882_v8  ;;  %v4155_v40 = vmul.f32 %v2169_v22, %v4041_v53 }
 0x1f1   : > { %v2085_v63 = vmul.f32 0.7978846, %v2053_v41  ;;  %v1885_v4 = vpop.f32.mrf.mxu1  ;;  %v2143_v60 = vadd.f32 1.0, %v3366_v26  ;;  %v2141_v14 = vadd.f32 1.0, %v3368_v0  ;;  %3381 = vtanh.f32 %v2087_v16 }
 0x1f2   : > { %v3370_v43 = vpop.eup %3369  ;;  %v2056_v62 = vadd.f32 %v2024_v2, %v4132_v13  ;;  %v2022_v41 = vmul.f32 0.044715, %v1990_v25  ;;  %v1963_v21 = vmul.f32 %v4149_v1, %v4149_v1  ;;  %v4161_v10 = vmul.f32 %v2172_v50, %v4047_v9 }
 0x1f3   : > { %v3372_v34 = vpop.eup %3371  ;;  %v3273_v27 = vpop.f32.mrf.mxu1  ;;  %3383 = vtanh.f32 %v2085_v63  ;;  %v2202_v8 = vmul.f32 %v2170_v47, %v4053_v15  ;;  %v1961_v53 = vmul.f32 %v4152_v56, %v4152_v56  ;;  %v4167_v26 = vadd.f32 %v3270_v6, %v4033_v48 }
 0x1f4   : > { %v2144_v22 = vadd.f32 1.0, %v3370_v43  ;;  %v2142_v16 = vadd.f32 1.0, %v3372_v34  ;;  %v2088_v0 = vmul.f32 0.7978846, %v2056_v62  ;;  %v2054_v2 = vadd.f32 %v2022_v41, %v4138_v19 }
 0x1f5   : > { %v3374_v12 = vpop.eup %3373  ;;  %v1898_v63 = vpop.f32.mrf.mxu1  ;;  %v1995_v9 = vmul.f32 %v1963_v21, %v4149_v1  ;;  %v1993_v50 = vmul.f32 %v1961_v53, %v4152_v56  ;;  %v1964_v15 = vmul.f32 %v4167_v26, %v4167_v26  ;;  %v2175_v45 = vmul.f32 0.5, %v2143_v60 }
 0x1f6   : > { %v2147_v42 = vadd.f32 1.0, %v3374_v12  ;;  %v2173_v6 = vmul.f32 0.5, %v2141_v14  ;;  %3385 = vtanh.f32 %v2088_v0  ;;  %v2086_v35 = vmul.f32 0.7978846, %v2054_v2 }
 0x1f7   : > { %v3376_v25 = vpop.eup %3375  ;;  %v3274_v47 = vpop.f32.mrf.mxu1  ;;  %v2027_v43 = vmul.f32 0.044715, %v1995_v9  ;;  %v2025_v34 = vmul.f32 0.044715, %v1993_v50  ;;  %v1996_v62 = vmul.f32 %v1964_v15, %v4167_v26  ;;  %v2176_v12 = vmul.f32 0.5, %v2144_v22 }
 0x1f8   : > { %v2145_v24 = vadd.f32 1.0, %v3376_v25  ;;  %v2174_v61 = vmul.f32 0.5, %v2142_v16  ;;  %v4176_v21 = vadd.f32 %v4033_v48, %v1885_v4  ;;  %v4179_v53 = vadd.f32 %v3273_v27, %v4033_v48 }
 0x1f9   : > { %v1901_v41 = vpop.f32.mrf.mxu1  ;;  %v3378_v59 = vpop.eup %3377  ;;  %v2179_v38 = vmul.f32 0.5, %v2147_v42  ;;  %3387 = vtanh.f32 %v2086_v35  ;;  %v2059_v60 = vadd.f32 %v2027_v43, %v4149_v1  ;;  %v2057_v14 = vadd.f32 %v2025_v34, %v4152_v56 }
 0x1fa   : > { %v2177_v25 = vmul.f32 0.5, %v2145_v24  ;;  %v2028_v9 = vmul.f32 0.044715, %v1996_v62  ;;  %v1962_v22 = vmul.f32 %v4176_v21, %v4176_v21  ;;  %v1967_v4 = vmul.f32 %v4179_v53, %v4179_v53 }
 0x1fb   : > { %v3277_v0 = vpop.f32.mrf.mxu1  ;;  %v2234_v27 = vpack.c.bf16 %v4161_v10, %v4145_v23  ;;  %v2148_v16 = vadd.f32 1.0, %v3378_v59  ;;  %v2091_v42 = vmul.f32 0.7978846, %v2059_v60  ;;  %v2089_v35 = vmul.f32 0.7978846, %v2057_v14 }
 0x1fc   : > { %v3380_v2 = vpop.eup %3379  ;;  %v2060_v15 = vadd.f32 %v2028_v9, %v4167_v26  ;;  %v1994_v43 = vmul.f32 %v1962_v22, %v4176_v21  ;;  %v1999_v24 = vmul.f32 %v1967_v4, %v4179_v53  ;;  %v2233_v34 = vpack.c.bf16 %v2202_v8, %v4155_v40 }
 0x1fd   : > { %v1914_v50 = vpop.f32.mrf.mxu1  ;;  %v2207_v62 = vmul.f32 %v2175_v45, %v4060_v3  ;;  %v2205_v33 = vmul.f32 %v2173_v6, %v4067_v17  ;;  %v2208_v37 = vmul.f32 %v2176_v12, %v4074_v58  ;;  %v2146_v39 = vadd.f32 1.0, %v3380_v2 }
 0x1fe   : > { %v3382_v59 = vpop.eup %3381  ;;  %v2206_v10 = vmul.f32 %v2174_v61, %v4078_v36  ;;  %v4198_v60 = vmul.f32 %v2179_v38, %v4086_v29  ;;  %v4201_v14 = vmul.f32 %v2177_v25, %v4094_v7  ;;  %v2026_v9 = vmul.f32 0.044715, %v1994_v43  ;;  %3291 = vmatprep.mubr.msk.bf16.mxu0 %vm2288_vm1, %v2233_v34 }
 0x1ff   : > { %v3278_v23 = vpop.f32.mrf.mxu1  ;;  %v2180_v45 = vmul.f32 0.5, %v2148_v16  ;;  %3389 = vtanh.f32 %v2089_v35  ;;  %v2092_v3 = vmul.f32 0.7978846, %v2060_v15  ;;  %v4205_v17 = vadd.f32 %v4033_v48, %v1898_v63  ;;  %3292 = vmatmul.mubr.msk.bf16.vlgmr.msra.gmra.mxu0 %vm2288_vm1, %v2234_v27 }
 0x200   : > { %v3384_v40 = vpop.eup %3383  ;;  %3391 = vtanh.f32 %v2091_v42  ;;  %v2058_v61 = vadd.f32 %v2026_v9, %v4176_v21  ;;  %v2031_v38 = vmul.f32 0.044715, %v1999_v24  ;;  %v4210_v58 = vadd.f32 %v3274_v47, %v4033_v48 }
 0x201   : > { %v2178_v36 = vmul.f32 0.5, %v2146_v39  ;;  %v2151_v29 = vadd.f32 1.0, %v3382_v59  ;;  %v1965_v7 = vmul.f32 %v4205_v17, %v4205_v17  ;;  %v4215_v8 = vadd.f32 %v4033_v48, %v1901_v41  ;;  %v1917_v6 = vpop.f32.mrf.mxu1 }
 0x202   : > { %v2149_v63 = vadd.f32 1.0, %v3384_v40  ;;  %v2090_v12 = vmul.f32 0.7978846, %v2058_v61  ;;  %v1968_v2 = vmul.f32 %v4210_v58, %v4210_v58  ;;  %v4220_v25 = vadd.f32 %v3277_v0, %v4033_v48 }
 0x203   : > { %v3386_v22 = vpop.eup %3385  ;;  %3393 = vtanh.f32 %v2092_v3  ;;  %v1997_v39 = vmul.f32 %v1965_v7, %v4205_v17  ;;  %v1966_v47 = vmul.f32 %v4215_v8, %v4215_v8  ;;  %v2235_v4 = vpack.c.bf16 %v2206_v10, %v2205_v33  ;;  %v3281_v43 = vpop.f32.mrf.mxu1 }
 0x204   : > { %3395 = vtanh.f32 %v2090_v12  ;;  %v2063_v41 = vadd.f32 %v2031_v38, %v4179_v53  ;;  %v2000_v27 = vmul.f32 %v1968_v2, %v4210_v58  ;;  %v1971_v16 = vmul.f32 %v4220_v25, %v4220_v25 }
 0x205   : > { %v2152_v42 = vadd.f32 1.0, %v3386_v22  ;;  %v2029_v35 = vmul.f32 0.044715, %v1997_v39  ;;  %v1998_v0 = vmul.f32 %v1966_v47, %v4215_v8  ;;  %3295 = vmatprep.mubr.msk.bf16.mxu0 %vm2288_vm1, %v2235_v4  ;;  %v4232_v15 = vadd.f32 %v4033_v48, %v1914_v50 }
 0x206   : > { %v3388_v24 = vpop.eup %3387  ;;  %v2183_v33 = vmul.f32 0.5, %v2151_v29  ;;  %v2032_v34 = vmul.f32 0.044715, %v2000_v27  ;;  %v2003_v59 = vmul.f32 %v1971_v16, %v4220_v25  ;;  %v2236_v10 = vpack.c.bf16 %v2208_v37, %v2207_v62 }
 0x207   : > { %v2181_v9 = vmul.f32 0.5, %v2149_v63  ;;  %v2061_v40 = vadd.f32 %v2029_v35, %v4205_v17  ;;  %v2030_v3 = vmul.f32 0.044715, %v1998_v0  ;;  %v1969_v61 = vmul.f32 %v4232_v15, %v4232_v15  ;;  %v1930_v63 = vpop.f32.mrf.mxu1 }
 0x208   : > { %v2150_v38 = vadd.f32 1.0, %v3388_v24  ;;  %v2095_v7 = vmul.f32 0.7978846, %v2063_v41  ;;  %v2064_v12 = vadd.f32 %v2032_v34, %v4210_v58  ;;  %3296 = vmatmul.mubr.msk.bf16.gmra.mxu0 %vm2288_vm1, %v2236_v10  ;;  %v4241_v50 = vadd.f32 %v3278_v23, %v4033_v48 }
 0x209   : > { %v2184_v29 = vmul.f32 0.5, %v2152_v42  ;;  %v2093_v2 = vmul.f32 0.7978846, %v2061_v40  ;;  %v2062_v37 = vadd.f32 %v2030_v3, %v4215_v8  ;;  %v2001_v62 = vmul.f32 %v1969_v61, %v4232_v15 }
 0x20a   : > { %v2096_v22 = vmul.f32 0.7978846, %v2064_v12  ;;  %v2035_v39 = vmul.f32 0.044715, %v2003_v59  ;;  %v1972_v47 = vmul.f32 %v4241_v50, %v4241_v50  ;;  %v4248_v4 = vadd.f32 %v4033_v48, %v1917_v6 }
 0x20b   : > { %v2212_v41 = vmul.f32 %v2180_v45, %v4101_v11  ;;  %v2210_v23 = vmul.f32 %v2178_v36, %v4109_v20  ;;  %3397 = vtanh.f32 %v2093_v2  ;;  %v2094_v27 = vmul.f32 0.7978846, %v2062_v37  ;;  %v3282_v45 = vpop.f32.mrf.mxu1 }
 0x20c   : > { %v3390_v16 = vpop.eup %3389  ;;  %v4253_v42 = vmul.f32 %v2183_v33, %v4116_v44  ;;  %v2182_v35 = vmul.f32 0.5, %v2150_v38  ;;  %3399 = vtanh.f32 %v2095_v7  ;;  %v2033_v0 = vmul.f32 0.044715, %v2001_v62 }
 0x20d   : > { %v3392_v24 = vpop.eup %3391  ;;  %v2213_v34 = vmul.f32 %v2181_v9, %v4123_v18  ;;  %3401 = vtanh.f32 %v2094_v27  ;;  %v2004_v6 = vmul.f32 %v1972_v47, %v4241_v50  ;;  %v1970_v11 = vmul.f32 %v4248_v4, %v4248_v4  ;;  %v1933_v37 = vpop.f32.mrf.mxu1 }
 0x20e   : > { %v4260_v20 = vmul.f32 %v2184_v29, %v4132_v13  ;;  %3403 = vtanh.f32 %v2096_v22  ;;  %v2067_v44 = vadd.f32 %v2035_v39, %v4220_v25  ;;  %v2065_v36 = vadd.f32 %v2033_v0, %v4232_v15 }
 0x20f   : > { %v2153_v33 = vadd.f32 1.0, %v3390_v16  ;;  %v2036_v59 = vmul.f32 0.044715, %v2004_v6  ;;  %v2002_v10 = vmul.f32 %v1970_v11, %v4248_v4  ;;  %v4266_v18 = vadd.f32 %v3281_v43, %v4033_v48 }
 0x210   : > { %v3394_v9 = vpop.eup %3393  ;;  %v2214_v40 = vmul.f32 %v2182_v35, %v4138_v19  ;;  %v2155_v3 = vadd.f32 1.0, %v3392_v24  ;;  %v2097_v61 = vmul.f32 0.7978846, %v2065_v36  ;;  %v2237_v13 = vpack.c.bf16 %v2210_v23, %v4201_v14 }
 0x211   : > { %v3396_v38 = vpop.eup %3395  ;;  %v2068_v7 = vadd.f32 %v2036_v59, %v4241_v50  ;;  %v2034_v12 = vmul.f32 0.044715, %v2002_v10  ;;  %v1975_v29 = vmul.f32 %v4266_v18, %v4266_v18  ;;  %v4274_v2 = vadd.f32 %v4033_v48, %v1930_v63 }
 0x212   : > { %v2154_v43 = vadd.f32 1.0, %v3396_v38  ;;  %v2099_v62 = vmul.f32 0.7978846, %v2067_v44  ;;  %3405 = vtanh.f32 %v2097_v61  ;;  %3299 = vmatprep.mubr.msk.bf16.mxu0 %vm2288_vm1, %v2237_v13  ;;  %v2238_v19 = vpack.c.bf16 %v2212_v41, %v4198_v60 }
 0x213   : > { %v2185_v22 = vmul.f32 0.5, %v2153_v33  ;;  %v2100_v14 = vmul.f32 0.7978846, %v2068_v7  ;;  %v2066_v39 = vadd.f32 %v2034_v12, %v4248_v4  ;;  %v2007_v47 = vmul.f32 %v1975_v29, %v4266_v18 }
 0x214   : > { %v2186_v23 = vmul.f32 0.5, %v2154_v43  ;;  %v1973_v27 = vmul.f32 %v4274_v2, %v4274_v2  ;;  %3300 = vmatmul.mubr.msk.bf16.gmra.mxu0 %vm2288_vm1, %v2238_v19  ;;  %v4284_v63 = vadd.f32 %v3282_v45, %v4033_v48  ;;  %v4287_v16 = vadd.f32 %v4033_v48, %v1933_v37 }
 0x215   : > { %v2156_v35 = vadd.f32 1.0, %v3394_v9  ;;  %3407 = vtanh.f32 %v2100_v14  ;;  %v2098_v60 = vmul.f32 0.7978846, %v2066_v39  ;;  %v2039_v41 = vmul.f32 0.044715, %v2007_v47 }
 0x216   : > { %v2218_v0 = vmul.f32 %v2186_v23, %v4176_v21  ;;  %v2005_v24 = vmul.f32 %v1973_v27, %v4274_v2  ;;  %v1976_v6 = vmul.f32 %v4284_v63, %v4284_v63  ;;  %v1974_v11 = vmul.f32 %v4287_v16, %v4287_v16 }
 0x217   : > { %v2217_v45 = vmul.f32 %v2185_v22, %v4152_v56  ;;  %3409 = vtanh.f32 %v2098_v60  ;;  %v2071_v48 = vadd.f32 %v2039_v41, %v4266_v18  ;;  %v2239_v44 = vpack.c.bf16 %v2214_v40, %v2213_v34 }
 0x218   : > { %v3398_v36 = vpop.eup %3397  ;;  %3411 = vtanh.f32 %v2099_v62  ;;  %v2037_v33 = vmul.f32 0.044715, %v2005_v24  ;;  %v2008_v59 = vmul.f32 %v1976_v6, %v4284_v63  ;;  %v2006_v21 = vmul.f32 %v1974_v11, %v4287_v16 }
 0x219   : > { %v3400_v10 = vpop.eup %3399  ;;  %v2188_v9 = vmul.f32 0.5, %v2156_v35  ;;  %v2157_v61 = vadd.f32 1.0, %v3398_v36  ;;  %3303 = vmatprep.mubr.msk.bf16.mxu0 %vm2288_vm1, %v2239_v44  ;;  %v2241_v13 = vpack.c.bf16 %v2218_v0, %v2217_v45  ;;  %v2240_v34 = vpack.c.bf16 %v4260_v20, %v4253_v42 }
 0x21a   : > { %v3402_v38 = vpop.eup %3401  ;;  %v2069_v56 = vadd.f32 %v2037_v33, %v4274_v2  ;;  %v2040_v7 = vmul.f32 0.044715, %v2008_v59  ;;  %v2038_v12 = vmul.f32 0.044715, %v2006_v21  ;;  %v2103_v43 = vmul.f32 0.7978846, %v2071_v48 }
 0x21b   : > { %v3404_v40 = vpop.eup %3403  ;;  %v2189_v29 = vmul.f32 0.5, %v2157_v61  ;;  %v2158_v37 = vadd.f32 1.0, %v3402_v38  ;;  %v2187_v62 = vmul.f32 0.5, %v2155_v3  ;;  %v2220_v47 = vmul.f32 %v2188_v9, %v4167_v26 }
 0x21c   : > { %v2101_v19 = vmul.f32 0.7978846, %v2069_v56  ;;  %v2072_v22 = vadd.f32 %v2040_v7, %v4284_v63  ;;  %3304 = vmatmul.mubr.msk.bf16.gmra.mxu0 %vm2288_vm1, %v2240_v34  ;;  %v2070_v39 = vadd.f32 %v2038_v12, %v4287_v16  ;;  %v2160_v23 = vadd.f32 1.0, %v3404_v40 }
 0x21d   : > { %v2190_v14 = vmul.f32 0.5, %v2158_v37  ;;  %3307 = vmatprep.mubr.msk.bf16.mxu0 %vm2288_vm1, %v2241_v13  ;;  %v2221_v27 = vmul.f32 %v2189_v29, %v4205_v17  ;;  %v2219_v60 = vmul.f32 %v2187_v62, %v4149_v1  ;;  %v2159_v41 = vadd.f32 1.0, %v3400_v10 }
 0x21e   : > { %3413 = vtanh.f32 %v2101_v19  ;;  %v2104_v42 = vmul.f32 0.7978846, %v2072_v22  ;;  %v2102_v35 = vmul.f32 0.7978846, %v2070_v39  ;;  %v2192_v11 = vmul.f32 0.5, %v2160_v23 }
 0x21f   : > { %v3406_v20 = vpop.eup %3405  ;;  %v2222_v3 = vmul.f32 %v2190_v14, %v4215_v8  ;;  %3415 = vtanh.f32 %v2103_v43  ;;  %v2242_v26 = vpack.c.bf16 %v2220_v47, %v2219_v60  ;;  %v2191_v48 = vmul.f32 0.5, %v2159_v41 }
 0x220   : > { %3417 = vtanh.f32 %v2104_v42  ;;  %v2161_v0 = vadd.f32 1.0, %v3406_v20  ;;  %v2224_v8 = vmul.f32 %v2192_v11, %v4210_v58  ;;  %v4331_v20 = vld [vmem:[%s4489_s13] ss:$0 sm:$0xff] }
 0x221   : > { %3419 = vtanh.f32 %v2102_v35  ;;  %v2243_v24 = vpack.c.bf16 %v2222_v3, %v2221_v27  ;;  %v2223_v59 = vmul.f32 %v2191_v48, %v4179_v53 }
 0x222   : > { %v3408_v6 = vpop.eup %3407  ;;  %v2193_v17 = vmul.f32 0.5, %v2161_v0 }
 0x223   : > { %v2164_v1 = vadd.f32 1.0, %v3408_v6  ;;  %v2244_v13 = vpack.c.bf16 %v2224_v8, %v2223_v59 }
 0x224   : > { %v3410_v45 = vpop.eup %3409  ;;  %3308 = vmatmul.mubr.msk.bf16.gmra.mxu0 %vm2288_vm1, %v2242_v26  ;;  %v2225_v10 = vmul.f32 %v2193_v17, %v4232_v15 }
 0x225   : > { %v3412_v44 = vpop.eup %3411  ;;  %v2162_v36 = vadd.f32 1.0, %v3410_v45  ;;  %3311 = vmatprep.mubr.msk.bf16.mxu0 %vm2288_vm1, %v2243_v24  ;;  %v2196_v61 = vmul.f32 0.5, %v2164_v1 }
 0x226   : > { %v2163_v21 = vadd.f32 1.0, %v3412_v44 }
 0x227   : > { %v2194_v33 = vmul.f32 0.5, %v2162_v36  ;;  %v2228_v53 = vmul.f32 %v2196_v61, %v4241_v50 }
 0x228   : > { %v2195_v12 = vmul.f32 0.5, %v2163_v21 }
 0x229   : > { %v2226_v9 = vmul.f32 %v2194_v33, %v4248_v4 }
 0x22a   : > { %v2227_v4 = vmul.f32 %v2195_v12, %v4220_v25 }
 0x22b   : > { %v3414_v38 = vpop.eup %3413  ;;  %v2245_v56 = vpack.c.bf16 %v2226_v9, %v2225_v10 }
 0x22c   : > { %v3416_v7 = vpop.eup %3415  ;;  %v2165_v34 = vadd.f32 1.0, %v3414_v38  ;;  %3312 = vmatmul.mubr.msk.bf16.gmra.mxu0 %vm2288_vm1, %v2244_v13  ;;  %v2246_v22 = vpack.c.bf16 %v2228_v53, %v2227_v4  ;;  %v4534_v4 = vld [vmem:[#allocation4_spill] sm:$0xff] }
 0x22d   : > { %v3418_v40 = vpop.eup %3417  ;;  %3315 = vmatprep.mubr.msk.bf16.mxu0 %vm2288_vm1, %v2245_v56  ;;  %v2167_v43 = vadd.f32 1.0, %v3416_v7 }
 0x22e   : > { %v3420_v58 = vpop.eup %3419  ;;  %v2168_v29 = vadd.f32 1.0, %v3418_v40  ;;  %v2197_v37 = vmul.f32 0.5, %v2165_v34 }
 0x22f   : > { %v2166_v15 = vadd.f32 1.0, %v3420_v58  ;;  %v2199_v47 = vmul.f32 0.5, %v2167_v43 }
 0x230   : > { %v2200_v19 = vmul.f32 0.5, %v2168_v29  ;;  %v2229_v14 = vmul.f32 %v2197_v37, %v4274_v2 }
 0x231   : > { %v2198_v62 = vmul.f32 0.5, %v2166_v15  ;;  %v2231_v42 = vmul.f32 %v2199_v47, %v4266_v18 }
 0x232   : > { %v2232_v50 = vmul.f32 %v2200_v19, %v4284_v63 }
 0x233   : > { %v2230_v39 = vmul.f32 %v2198_v62, %v4287_v16 }
 0x234   : > { %3316 = vmatmul.mubr.msk.bf16.gmra.mxu0 %vm2288_vm1, %v2246_v22  ;;  %v2248_v25 = vpack.c.bf16 %v2232_v50, %v2231_v42  ;;  %v4535_v22 = vld [vmem:[#allocation9_spill] sm:$0xff] }
 0x235   : > { %v2247_v23 = vpack.c.bf16 %v2230_v39, %v2229_v14 }
 0x237   : > { %3319 = vmatprep.mubr.msk.bf16.mxu0 %vm2288_vm1, %v2247_v23  ;;  %v4536_v23 = vld [vmem:[#allocation7_spill] sm:$0xff] }
 0x23c   : > { %3320 = vmatmul.mubr.msk.bf16.gmra.mxu0 %vm2288_vm1, %v2248_v25 }
 0x2bf   : > { %v3293_v2 = vpop.f32.mrf.mxu0 }
 0x2c0   : > { %v2380_v16 = vadd.f32 %v3293_v2, %v4331_v20  ;;  %v4537_v2 = vld [vmem:[#allocation6_spill] sm:$0xff] }
 0x2c1   : > { %v2371_v18 = vpop.f32.mrf.mxu0 }
 0x2c2   : > { %v2500_v63 = vadd.f32 %v2380_v16, %v3867_v51  ;;  %v2372_v27 = vadd.f32 %v4331_v20, %v2371_v18 }
 0x2c3   : > { %v3294_v3 = vpop.f32.mrf.mxu0 }
 0x2c4   : > { %2532 = vst.msk [vmem:[%s4338_s27 + $0x10] sm:$0xff] %vm872_vm0, %v2500_v63  ;;  %v2498_v35 = vadd.f32 %v2372_v27, %v3861_v49  ;;  %v2383_v60 = vadd.f32 %v3294_v3, %v4331_v20  ;;  %v4538_v27 = vld [vmem:[#allocation8_spill] sm:$0xff] }
 0x2c5   : > { %v2374_v41 = vpop.f32.mrf.mxu0 }
 0x2c6   : > { %2530 = vst.msk [vmem:[%s4338_s27] sm:$0xff] %vm872_vm0, %v2498_v35  ;;  %v2501_v0 = vadd.f32 %v2383_v60, %v3858_v46  ;;  %v2375_v24 = vadd.f32 %v4331_v20, %v2374_v41  ;;  %v4539_v41 = vld [vmem:[#allocation13_spill] sm:$0xff] }
 0x2c8   : > { %2533 = vst.msk [vmem:[%s4338_s27 + $0x18] sm:$0xff] %vm872_vm0, %v2501_v0  ;;  %v2499_v51 = vadd.f32 %v2375_v24, %v3864_v5  ;;  %v3297_v6 = vpop.f32.mrf.mxu0 }
 0x2c9   : > { %v2396_v11 = vadd.f32 %v3297_v6, %v4331_v20  ;;  %v4540_v6 = vld [vmem:[#allocation11_spill] sm:$0xff] }
 0x2ca   : > { %2531 = vst.msk [vmem:[%s4338_s27 + $0x8] sm:$0xff] %vm872_vm0, %v2499_v51  ;;  %v2387_v49 = vpop.f32.mrf.mxu0 }
 0x2cb   : > { %v2504_v26 = vadd.f32 %v2396_v11, %v3885_v32  ;;  %v2388_v45 = vadd.f32 %v4331_v20, %v2387_v49 }
 0x2cc   : > { %v3298_v48 = vpop.f32.mrf.mxu0 }
 0x2cd   : > { %2536 = vst.msk [vmem:[%s4338_s27 + $0x30] sm:$0xff] %vm872_vm0, %v2504_v26  ;;  %v2502_v46 = vadd.f32 %v2388_v45, %v3879_v30  ;;  %v2399_v44 = vadd.f32 %v3298_v48, %v4331_v20  ;;  %v4541_v45 = vld [vmem:[#allocation10_spill] sm:$0xff] }
 0x2ce   : > { %v2390_v5 = vpop.f32.mrf.mxu0 }
 0x2cf   : > { %2534 = vst.msk [vmem:[%s4338_s27 + $0x20] sm:$0xff] %vm872_vm0, %v2502_v46  ;;  %v2505_v17 = vadd.f32 %v2399_v44, %v3876_v28  ;;  %v2391_v36 = vadd.f32 %v4331_v20, %v2390_v5  ;;  %v4542_v5 = vld [vmem:[#allocation12_spill] sm:$0xff] }
 0x2d1   : > { %2537 = vst.msk [vmem:[%s4338_s27 + $0x38] sm:$0xff] %vm872_vm0, %v2505_v17  ;;  %v2503_v32 = vadd.f32 %v2391_v36, %v3882_v31 }
 0x2d3   : > { %2535 = vst.msk [vmem:[%s4338_s27 + $0x28] sm:$0xff] %vm872_vm0, %v2503_v32 }
 0x2d4   : > { %v3301_v8 = vpop.f32.mrf.mxu0 }
 0x2d5   : > { %v2412_v30 = vadd.f32 %v3301_v8, %v4331_v20  ;;  %v4543_v8 = vld [vmem:[#allocation17_spill] sm:$0xff] }
 0x2d6   : > { %v2403_v1 = vpop.f32.mrf.mxu0 }
 0x2d7   : > { %v2508_v33 = vadd.f32 %v2412_v30, %v3907_v57  ;;  %v2404_v59 = vadd.f32 %v4331_v20, %v2403_v1 }
 0x2d8   : > { %v3302_v21 = vpop.f32.mrf.mxu0 }
 0x2d9   : > { %2540 = vst.msk [vmem:[%s4338_s27 + $0x50] sm:$0xff] %vm872_vm0, %v2508_v33  ;;  %v2506_v28 = vadd.f32 %v2404_v59, %v3900_v54  ;;  %v2415_v31 = vadd.f32 %v3302_v21, %v4331_v20  ;;  %v4531_v54 = vld [vmem:[#allocation5_spill] sm:$0xff]  ;;  %v4544_v59 = vld [vmem:[#allocation15_spill] sm:$0xff] }
 0x2da   : > { %v2406_v10 = vpop.f32.mrf.mxu0 }
 0x2db   : > { %2538 = vst.msk [vmem:[%s4338_s27 + $0x40] sm:$0xff] %vm872_vm0, %v2506_v28  ;;  %v2509_v9 = vadd.f32 %v2415_v31, %v3897_v52  ;;  %v2407_v61 = vadd.f32 %v4331_v20, %v2406_v10  ;;  %v4532_v52 = vld [vmem:[#allocation3_spill] sm:$0xff]  ;;  %v4545_v10 = vld [vmem:[#allocation14_spill] sm:$0xff] }
 0x2dc   : > { %v3305_v13 = vpop.f32.mrf.mxu0 }
 0x2dd   : > { %2541 = vst.msk [vmem:[%s4338_s27 + $0x58] sm:$0xff] %vm872_vm0, %v2509_v9  ;;  %v2507_v57 = vadd.f32 %v2407_v61, %v3903_v55  ;;  %v2428_v38 = vadd.f32 %v3305_v13, %v4331_v20  ;;  %v4533_v55 = vld [vmem:[#allocation2_spill] sm:$0xff] }
 0x2de   : > { %v2419_v56 = vpop.f32.mrf.mxu0 }
 0x2df   : > { %2539 = vst.msk [vmem:[%s4338_s27 + $0x48] sm:$0xff] %vm872_vm0, %v2507_v57  ;;  %v2512_v7 = vadd.f32 %v2428_v38, %v4531_v54  ;;  %v2420_v12 = vadd.f32 %v4331_v20, %v2419_v56  ;;  %v4546_v57 = vld [vmem:[#allocation16_spill] sm:$0xff] }
 0x2e0   : > { %v3306_v34 = vpop.f32.mrf.mxu0 }
 0x2e1   : > { %2544 = vst.msk [vmem:[%s4338_s27 + $0x70] sm:$0xff] %vm872_vm0, %v2512_v7  ;;  %v2510_v40 = vadd.f32 %v2420_v12, %v4532_v52  ;;  %v2431_v58 = vadd.f32 %v3306_v34, %v4331_v20  ;;  %v4547_v7 = vld [vmem:[#allocation21_spill] sm:$0xff] }
 0x2e2   : > { %v2422_v53 = vpop.f32.mrf.mxu0 }
 0x2e3   : > { %2542 = vst.msk [vmem:[%s4338_s27 + $0x60] sm:$0xff] %vm872_vm0, %v2510_v40  ;;  %v2513_v29 = vadd.f32 %v2431_v58, %v4533_v55  ;;  %v2423_v37 = vadd.f32 %v4331_v20, %v2422_v53  ;;  %v4548_v40 = vld [vmem:[#allocation19_spill] sm:$0xff] }
 0x2e4   : > { %v3309_v15 = vpop.f32.mrf.mxu0 }
 0x2e5   : > { %2545 = vst.msk [vmem:[%s4338_s27 + $0x78] sm:$0xff] %vm872_vm0, %v2513_v29  ;;  %v2511_v43 = vadd.f32 %v2423_v37, %v4534_v4  ;;  %v2444_v62 = vadd.f32 %v3309_v15, %v4331_v20  ;;  %v4549_v29 = vld [vmem:[#allocation18_spill] sm:$0xff]  ;;  %v4550_v4 = vld [vmem:[#allocation20_spill] sm:$0xff] }
 0x2e6   : > { %v2435_v19 = vpop.f32.mrf.mxu0 }
 0x2e7   : > { %2543 = vst.msk [vmem:[%s4338_s27 + $0x68] sm:$0xff] %vm872_vm0, %v2511_v43  ;;  %v2516_v14 = vadd.f32 %v2444_v62, %v4535_v22  ;;  %v2436_v39 = vadd.f32 %v4331_v20, %v2435_v19 }
 0x2e8   : > { %v3310_v47 = vpop.f32.mrf.mxu0 }
 0x2e9   : > { %2548 = vst.msk [vmem:[%s4338_s27 + $0x90] sm:$0xff] %vm872_vm0, %v2516_v14  ;;  %v2514_v50 = vadd.f32 %v2436_v39, %v4536_v23  ;;  %v2447_v42 = vadd.f32 %v3310_v47, %v4331_v20 }
 0x2ea   : > { %v2438_v25 = vpop.f32.mrf.mxu0 }
 0x2eb   : > { %2546 = vst.msk [vmem:[%s4338_s27 + $0x80] sm:$0xff] %vm872_vm0, %v2514_v50  ;;  %v2517_v16 = vadd.f32 %v2447_v42, %v4537_v2  ;;  %v2439_v18 = vadd.f32 %v4331_v20, %v2438_v25 }
 0x2ec   : > { %v3313_v63 = vpop.f32.mrf.mxu0 }
 0x2ed   : > { %2549 = vst.msk [vmem:[%s4338_s27 + $0x98] sm:$0xff] %vm872_vm0, %v2517_v16  ;;  %v2515_v3 = vadd.f32 %v2439_v18, %v4538_v27  ;;  %v2460_v35 = vadd.f32 %v3313_v63, %v4331_v20 }
 0x2ee   : > { %v2451_v60 = vpop.f32.mrf.mxu0 }
 0x2ef   : > { %2547 = vst.msk [vmem:[%s4338_s27 + $0x88] sm:$0xff] %vm872_vm0, %v2515_v3  ;;  %v2520_v0 = vadd.f32 %v2460_v35, %v4539_v41  ;;  %v2452_v24 = vadd.f32 %v4331_v20, %v2451_v60 }
 0x2f0   : > { %v3314_v51 = vpop.f32.mrf.mxu0 }
 0x2f1   : > { %2552 = vst.msk [vmem:[%s4338_s27 + $0xb0] sm:$0xff] %vm872_vm0, %v2520_v0  ;;  %v2518_v11 = vadd.f32 %v2452_v24, %v4540_v6  ;;  %v2463_v49 = vadd.f32 %v3314_v51, %v4331_v20 }
 0x2f2   : > { %v2454_v26 = vpop.f32.mrf.mxu0 }
 0x2f3   : > { %2550 = vst.msk [vmem:[%s4338_s27 + $0xa0] sm:$0xff] %vm872_vm0, %v2518_v11  ;;  %v2521_v48 = vadd.f32 %v2463_v49, %v4541_v45  ;;  %v2455_v46 = vadd.f32 %v4331_v20, %v2454_v26 }
 0x2f4   : > { %v3317_v44 = vpop.f32.mrf.mxu0 }
 0x2f5   : > { %2553 = vst.msk [vmem:[%s4338_s27 + $0xb8] sm:$0xff] %vm872_vm0, %v2521_v48  ;;  %v2519_v17 = vadd.f32 %v2455_v46, %v4542_v5  ;;  %v2476_v36 = vadd.f32 %v3317_v44, %v4331_v20 }
 0x2f6   : > { %v2467_v32 = vpop.f32.mrf.mxu0 }
 0x2f7   : > { %2551 = vst.msk [vmem:[%s4338_s27 + $0xa8] sm:$0xff] %vm872_vm0, %v2519_v17  ;;  %v2524_v30 = vadd.f32 %v2476_v36, %v4543_v8  ;;  %v2468_v1 = vadd.f32 %v4331_v20, %v2467_v32 }
 0x2f8   : > { %v3318_v33 = vpop.f32.mrf.mxu0 }
 0x2f9   : > { %2556 = vst.msk [vmem:[%s4338_s27 + $0xd0] sm:$0xff] %vm872_vm0, %v2524_v30  ;;  %v2522_v21 = vadd.f32 %v2468_v1, %v4544_v59  ;;  %v2479_v28 = vadd.f32 %v3318_v33, %v4331_v20 }
 0x2fa   : > { %v2470_v31 = vpop.f32.mrf.mxu0 }
 0x2fb   : > { %2554 = vst.msk [vmem:[%s4338_s27 + $0xc0] sm:$0xff] %vm872_vm0, %v2522_v21  ;;  %v2525_v9 = vadd.f32 %v2479_v28, %v4545_v10  ;;  %v2471_v61 = vadd.f32 %v4331_v20, %v2470_v31 }
 0x2fc   : > { %v3321_v13 = vpop.f32.mrf.mxu0 }
 0x2fd   : > { %2557 = vst.msk [vmem:[%s4338_s27 + $0xd8] sm:$0xff] %vm872_vm0, %v2525_v9  ;;  %v2523_v38 = vadd.f32 %v2471_v61, %v4546_v57  ;;  %v2492_v56 = vadd.f32 %v3321_v13, %v4331_v20 }
 0x2fe   : > { %v2483_v54 = vpop.f32.mrf.mxu0 }
 0x2ff   : > { %2555 = vst.msk [vmem:[%s4338_s27 + $0xc8] sm:$0xff] %vm872_vm0, %v2523_v38  ;;  %v2528_v12 = vadd.f32 %v2492_v56, %v4547_v7  ;;  %v2484_v34 = vadd.f32 %v4331_v20, %v2483_v54 }
 0x300   : > { %v3322_v52 = vpop.f32.mrf.mxu0 }
 0x301   : > { %2560 = vst.msk [vmem:[%s4338_s27 + $0xf0] sm:$0xff] %vm872_vm0, %v2528_v12  ;;  %v2526_v58 = vadd.f32 %v2484_v34, %v4548_v40  ;;  %v2495_v53 = vadd.f32 %v3322_v52, %v4331_v20 }
 0x302   : > { %v2486_v55 = vpop.f32.mrf.mxu0 }
 0x303   : > { %2558 = vst.msk [vmem:[%s4338_s27 + $0xe0] sm:$0xff] %vm872_vm0, %v2526_v58  ;;  %v2529_v37 = vadd.f32 %v2495_v53, %v4549_v29  ;;  %v2487_v15 = vadd.f32 %v4331_v20, %v2486_v55 }
 0x305   : > { %2561 = vst.msk [vmem:[%s4338_s27 + $0xf8] sm:$0xff] %vm872_vm0, %v2529_v37  ;;  %v2527_v43 = vadd.f32 %v2487_v15, %v4550_v4 }
 0x307   : > { %2559 = vst.msk [vmem:[%s4338_s27 + $0xe8] sm:$0xff] %vm872_vm0, %v2527_v43 }
 0x308 PF: > { %s24_s15 = sadd.s32 1, %s3443_s15   ;;  %s4551_s29 = smov %s3439_s30 }
 0x309   : > { %p21_p5 = scmp.ge.s32.totalorder %s24_s15, 4   ;;  %s4552_s30 = smov %s4554_s16 }
 0x30b   :  { %23 = sbr.rel (!%p21_p5) target bundleno = 2 (0x2), region = 121 }

</bundles_post_ra>
